<compile_context>
chip_gen: v6e
topology: v6e:2x2x1
jax: 0.10.0
libtpu: 0.0.40
codegen_flags: <defaults>
</compile_context>

<pallas_src>
import functools

import jax
import jax.numpy as jnp
from jax.experimental import pallas as pl
from jax.experimental.pallas import tpu as pltpu

# ---------------------------------------------------------------------------
# Small shapes consistent with the module
# ---------------------------------------------------------------------------
B, T, N, D = 2, 8, 16, 32        # batch, seq_len, num_nodes, hidden_dim
M = B * N                        # GRU "batch" = batch_size * num_nodes


def _sigmoid(x):
    # sigmoid(x) == 0.5*(tanh(0.5*x) + 1): one EUP tanh, no VPU divide on the
    # recurrence's serial critical path.
    return 0.5 * (jnp.tanh(0.5 * x) + 1.0)


# ---------------------------------------------------------------------------
# Pallas kernel: GRU over time for one block of MB rows
# ---------------------------------------------------------------------------
def _gru_kernel(x_ref, wi_ref, wh_ref, bi_ref, bhn_ref, o_ref, *,
                seq_len, mb, hd):
    # x_ref  : (T, MB, H)  bf16  time-major input slab for this row block
    # wi_ref : (H, 3H)     bf16  input-side weights, gates packed [r|z|n]
    # wh_ref : (H, 3H)     bf16  hidden-side weights, gates packed [r|z|n]
    # bi_ref : (1, 3H)     f32   b_ih with b_hr/b_hz folded in
    # bhn_ref: (1, H)      f32   b_hn (must stay inside the r*(...) term)
    # o_ref  : (T, MB, H)  f32

    # Collapse (T, MB) -> T*MB: one fat MXU matmul covers every gate and every
    # time step of the input-side projection.
    x = x_ref[...].reshape(seq_len * mb, hd)
    gi = jnp.dot(x, wi_ref[...], preferred_element_type=jnp.float32) + bi_ref[...]

    wh = wh_ref[...]                                        # (H, 3H) bf16
    bhn = jnp.broadcast_to(bhn_ref[...], (mb, hd))          # hoisted broadcast

    h = jnp.zeros((mb, hd), jnp.float32)
    gh0 = jnp.zeros((mb, 3 * hd), jnp.float32)
    # Sequential recurrence over time (inherent data dependence); static unroll
    # keeps the whole chain visible to the LLO scheduler.
    for t in range(seq_len):
        # Single fused h-side matmul per step (N = 3H = 96 fits one MXU pass).
        # h == 0 at t == 0, so skip that matmul entirely.
        gh = gh0 if t == 0 else jnp.dot(
            h.astype(jnp.bfloat16), wh, preferred_element_type=jnp.float32)
        gi_t = gi[t * mb:(t + 1) * mb]                      # sublane-aligned
        r = _sigmoid(gi_t[:, :hd] + gh[:, :hd])
        z = _sigmoid(gi_t[:, hd:2 * hd] + gh[:, hd:2 * hd])
        n = jnp.tanh(gi_t[:, 2 * hd:] + r * (gh[:, 2 * hd:] + bhn))
        h = (1.0 - z) * n + z * h
        o_ref[t] = h
    # nn.Dropout: identity in eval mode.
    # TODO(synk): training-mode dropout (RNG mask) is not implemented.


# ---------------------------------------------------------------------------
# Wrapper: layout prep + pallas_call
# ---------------------------------------------------------------------------
def _pick_mb(m):
    # v7x has 2 TensorCores/chip: keep two "parallel" row blocks so both cores
    # run an independent recurrence chain.  v5e/v6e have 1 TC, where a grid is
    # just a serial loop: use one fat block and pay per-step overhead once.
    try:
        kind = jax.devices()[0].device_kind.lower()
    except Exception:
        kind = ""
    if ("v7" in kind or "7x" in kind) and m % 2 == 0 and (m // 2) % 8 == 0:
        return m // 2
    return m


def rnn_layer_forward(X, W_ih, W_hh, b_ih, b_hh, *, mb=None):
    b, t, n, d = X.shape
    m = b * n
    if mb is None:
        mb = _pick_mb(m)
    assert m % mb == 0 and mb % 8 == 0

    # PyTorch: X.transpose(1,2).reshape(B*N, T, H).  Kept time-major
    # (T, B*N, H) so per-step writes are leading-axis stores; the row index is
    # b*N + n, matching the module's ordering.  bf16 halves the slab DMA bytes
    # and feeds the MXU its native operand dtype.
    Xp = jnp.transpose(X, (1, 0, 2, 3)).reshape(t, m, d).astype(jnp.bfloat16)

    # Gate-packed weights (PyTorch gate order r, z, n), pre-transposed so the
    # kernel computes x @ W directly: (H, 3H) bf16.
    Wi = W_ih.T.astype(jnp.bfloat16)
    Wh = W_hh.T.astype(jnp.bfloat16)

    # Fold b_ih + (b_hr, b_hz, 0) into the precomputed input projection; only
    # b_hn must stay with the h-side term inside r*(...).
    b_fold = b_ih + jnp.concatenate(
        [b_hh[:d], b_hh[d:2 * d], jnp.zeros((d,), jnp.float32)])
    bi = b_fold.reshape(1, 3 * d).astype(jnp.float32)
    bhn = b_hh[2 * d:].reshape(1, d).astype(jnp.float32)

    kernel = functools.partial(_gru_kernel, seq_len=t, mb=mb, hd=d)
    out = pl.pallas_call(
        kernel,
        out_shape=jax.ShapeDtypeStruct((t, m, d), jnp.float32),
        grid_spec=pltpu.PrefetchScalarGridSpec(
            num_scalar_prefetch=0,
            grid=(m // mb,),
            in_specs=[
                pl.BlockSpec((t, mb, d), lambda i: (0, i, 0)),   # X slab
                pl.BlockSpec((d, 3 * d), lambda i: (0, 0)),      # W_ih packed
                pl.BlockSpec((d, 3 * d), lambda i: (0, 0)),      # W_hh packed
                pl.BlockSpec((1, 3 * d), lambda i: (0, 0)),      # folded biases
                pl.BlockSpec((1, d), lambda i: (0, 0)),          # b_hn
            ],
            out_specs=pl.BlockSpec((t, mb, d), lambda i: (0, i, 0)),
        ),
        compiler_params=pltpu.CompilerParams(
            dimension_semantics=("parallel",)),
    )(Xp, Wi, Wh, bi, bhn)
    return out


# ---------------------------------------------------------------------------
# Pure-JAX reference (mirrors the PyTorch forward exactly, f32, eval mode)
# ---------------------------------------------------------------------------
def reference_forward(X, W_ih, W_hh, b_ih, b_hh):
    b, t, n, d = X.shape
    Xr = jnp.transpose(X, (0, 2, 1, 3)).reshape(b * n, t, d)
    h = jnp.zeros((b * n, d), jnp.float32)
    outs = []
    for i in range(t):
        xt = Xr[:, i, :]
        gi = xt @ W_ih.T + b_ih
        gh = h @ W_hh.T + b_hh
        ir, iz, inn = gi[:, :d], gi[:, d:2 * d], gi[:, 2 * d:]
        hr, hz, hn = gh[:, :d], gh[:, d:2 * d], gh[:, 2 * d:]
        r = jax.nn.sigmoid(ir + hr)
        z = jax.nn.sigmoid(iz + hz)
        nn_ = jnp.tanh(inn + r * hn)
        h = (1.0 - z) * nn_ + z * h
        outs.append(h)
    return jnp.stack(outs, axis=0)          # (T, B*N, H)


# ---------------------------------------------------------------------------
if __name__ == "__main__":
    key = jax.random.PRNGKey(0)
    k1, k2, k3, k4, k5 = jax.random.split(key, 5)

    # input signal: (batch, seq_len, num_nodes, hidden_dim)
    X = jax.random.normal(k1, (B, T, N, D), jnp.float32)

    # GRUCell parameters (PyTorch shapes: weight_* (3H, H), bias_* (3H,))
    s = 1.0 / (D ** 0.5)
    W_ih = jax.random.uniform(k2, (3 * D, D), jnp.float32, -s, s)
    W_hh = jax.random.uniform(k3, (3 * D, D), jnp.float32, -s, s)
    b_ih = jax.random.uniform(k4, (3 * D,), jnp.float32, -s, s)
    b_hh = jax.random.uniform(k5, (3 * D,), jnp.float32, -s, s)

    out = rnn_layer_forward(X, W_ih, W_hh, b_ih, b_hh)
    out = jax.block_until_ready(out)

    ref = reference_forward(X, W_ih, W_hh, b_ih, b_hh)
    ref = jax.block_until_ready(ref)

    assert out.shape == (T, B * N, D)
    # Tolerance accounts for the bf16 MXU operands (accumulation stays f32).
    max_err = float(jnp.max(jnp.abs(out - ref)))
    assert jnp.allclose(out, ref, atol=5e-2, rtol=5e-2), max_err
    print("KERNEL_OK")
</pallas_src>

<mosaic_0001>
module attributes {stable_mosaic.version = 11 : i64} {
  func.func @_gru_kernel(%arg0: i32, %arg1: memref<8x32x32xbf16, #tpu.memory_space<vmem>>, %arg2: memref<32x96xbf16, #tpu.memory_space<vmem>>, %arg3: memref<32x96xbf16, #tpu.memory_space<vmem>>, %arg4: memref<1x96xf32, #tpu.memory_space<vmem>>, %arg5: memref<1x32xf32, #tpu.memory_space<vmem>>, %arg6: memref<8x32x32xf32, #tpu.memory_space<vmem>>) attributes {dimension_semantics = [#tpu.dimension_semantics<parallel>], iteration_bounds = array<i64: 1>, scalar_prefetch = 0 : i64, scratch_operands = 0 : i64, tpu.core_type = #tpu.core_type<tc>, window_params = [{transform_indices = @transform_0, window_bounds = array<i64: 8, 32, 32>}, {pipeline_mode = #tpu.pipeline_mode<synchronous>, transform_indices = @transform_1, window_bounds = array<i64: 32, 96>}, {pipeline_mode = #tpu.pipeline_mode<synchronous>, transform_indices = @transform_2, window_bounds = array<i64: 32, 96>}, {pipeline_mode = #tpu.pipeline_mode<synchronous>, transform_indices = @transform_3, window_bounds = array<i64: 1, 96>}, {pipeline_mode = #tpu.pipeline_mode<synchronous>, transform_indices = @transform_4, window_bounds = array<i64: 1, 32>}, {transform_indices = @transform_5, window_bounds = array<i64: 8, 32, 32>}]} {
    %c0 = arith.constant 0 : index
    %c0_0 = arith.constant 0 : index
    %c0_1 = arith.constant 0 : index
    %0 = vector.load %arg1[%c0, %c0_0, %c0_1] : memref<8x32x32xbf16, #tpu.memory_space<vmem>>, vector<8x32x32xbf16>
    %1 = vector.shape_cast %0 : vector<8x32x32xbf16> to vector<256x32xbf16>
    %c0_2 = arith.constant 0 : index
    %c0_3 = arith.constant 0 : index
    %2 = vector.load %arg2[%c0_2, %c0_3] : memref<32x96xbf16, #tpu.memory_space<vmem>>, vector<32x96xbf16>
    %cst = arith.constant dense<0.000000e+00> : vector<256x96xf32>
    %3 = tpu.matmul %1, %2, %cst {dimension_numbers = #tpu.dot_dimension_numbers<[1], [0], [0], [1], [0, 0, 1, 1], [], []>} : vector<256x32xbf16>, vector<32x96xbf16>, vector<256x96xf32> -> vector<256x96xf32>
    %c0_4 = arith.constant 0 : index
    %c0_5 = arith.constant 0 : index
    %4 = vector.load %arg4[%c0_4, %c0_5] : memref<1x96xf32, #tpu.memory_space<vmem>>, vector<1x96xf32>
    %5 = vector.broadcast %4 : vector<1x96xf32> to vector<256x96xf32>
    %6 = arith.addf %3, %5 : vector<256x96xf32>
    %c0_6 = arith.constant 0 : index
    %c0_7 = arith.constant 0 : index
    %7 = vector.load %arg3[%c0_6, %c0_7] : memref<32x96xbf16, #tpu.memory_space<vmem>>, vector<32x96xbf16>
    %c0_8 = arith.constant 0 : index
    %c0_9 = arith.constant 0 : index
    %8 = vector.load %arg5[%c0_8, %c0_9] : memref<1x32xf32, #tpu.memory_space<vmem>>, vector<1x32xf32>
    %9 = vector.shape_cast %8 : vector<1x32xf32> to vector<1x32xf32>
    %10 = vector.broadcast %9 : vector<1x32xf32> to vector<32x32xf32>
    %cst_10 = arith.constant 0.000000e+00 : f32
    %11 = vector.broadcast %cst_10 : f32 to vector<32x32xf32>
    %cst_11 = arith.constant 0.000000e+00 : f32
    %12 = vector.broadcast %cst_11 : f32 to vector<32x96xf32>
    %13 = vector.extract_strided_slice %6 {offsets = [0, 0], sizes = [32, 96], strides = [1, 1]} : vector<256x96xf32> to vector<32x96xf32>
    %14 = vector.extract_strided_slice %13 {offsets = [0, 0], sizes = [32, 32], strides = [1, 1]} : vector<32x96xf32> to vector<32x32xf32>
    %15 = vector.extract_strided_slice %12 {offsets = [0, 0], sizes = [32, 32], strides = [1, 1]} : vector<32x96xf32> to vector<32x32xf32>
    %16 = arith.addf %14, %15 : vector<32x32xf32>
    %cst_12 = arith.constant 5.000000e-01 : f32
    %17 = vector.broadcast %cst_12 : f32 to vector<32x32xf32>
    %18 = arith.mulf %17, %16 : vector<32x32xf32>
    %19 = math.tanh %18 : vector<32x32xf32>
    %cst_13 = arith.constant 1.000000e+00 : f32
    %20 = vector.broadcast %cst_13 : f32 to vector<32x32xf32>
    %21 = arith.addf %19, %20 : vector<32x32xf32>
    %cst_14 = arith.constant 5.000000e-01 : f32
    %22 = vector.broadcast %cst_14 : f32 to vector<32x32xf32>
    %23 = arith.mulf %22, %21 : vector<32x32xf32>
    %24 = vector.extract_strided_slice %13 {offsets = [0, 32], sizes = [32, 32], strides = [1, 1]} : vector<32x96xf32> to vector<32x32xf32>
    %25 = vector.extract_strided_slice %12 {offsets = [0, 32], sizes = [32, 32], strides = [1, 1]} : vector<32x96xf32> to vector<32x32xf32>
    %26 = arith.addf %24, %25 : vector<32x32xf32>
    %cst_15 = arith.constant 5.000000e-01 : f32
    %27 = vector.broadcast %cst_15 : f32 to vector<32x32xf32>
    %28 = arith.mulf %27, %26 : vector<32x32xf32>
    %29 = math.tanh %28 : vector<32x32xf32>
    %cst_16 = arith.constant 1.000000e+00 : f32
    %30 = vector.broadcast %cst_16 : f32 to vector<32x32xf32>
    %31 = arith.addf %29, %30 : vector<32x32xf32>
    %cst_17 = arith.constant 5.000000e-01 : f32
    %32 = vector.broadcast %cst_17 : f32 to vector<32x32xf32>
    %33 = arith.mulf %32, %31 : vector<32x32xf32>
    %34 = vector.extract_strided_slice %13 {offsets = [0, 64], sizes = [32, 32], strides = [1, 1]} : vector<32x96xf32> to vector<32x32xf32>
    %35 = vector.extract_strided_slice %12 {offsets = [0, 64], sizes = [32, 32], strides = [1, 1]} : vector<32x96xf32> to vector<32x32xf32>
    %36 = arith.addf %35, %10 : vector<32x32xf32>
    %37 = arith.mulf %23, %36 : vector<32x32xf32>
    %38 = arith.addf %34, %37 : vector<32x32xf32>
    %39 = math.tanh %38 : vector<32x32xf32>
    %cst_18 = arith.constant 1.000000e+00 : f32
    %40 = vector.broadcast %cst_18 : f32 to vector<32x32xf32>
    %41 = arith.subf %40, %33 : vector<32x32xf32>
    %42 = arith.mulf %41, %39 : vector<32x32xf32>
    %43 = arith.mulf %33, %11 : vector<32x32xf32>
    %44 = arith.addf %42, %43 : vector<32x32xf32>
    %c0_19 = arith.constant 0 : index
    %c0_20 = arith.constant 0 : index
    %c0_21 = arith.constant 0 : index
    %45 = vector.load %arg6[%c0_19, %c0_20, %c0_21] : memref<8x32x32xf32, #tpu.memory_space<vmem>>, vector<1x32x32xf32>
    %46 = vector.shape_cast %45 : vector<1x32x32xf32> to vector<32x32xf32>
    %47 = vector.shape_cast %44 : vector<32x32xf32> to vector<1x32x32xf32>
    tpu.vector_store %arg6[%c0_19, %c0_20, %c0_21], %47 {strides = array<i32>} : memref<8x32x32xf32, #tpu.memory_space<vmem>>, vector<1x32x32xf32>,
    %48 = arith.truncf %44 : vector<32x32xf32> to vector<32x32xbf16>
    %cst_22 = arith.constant dense<0.000000e+00> : vector<32x96xf32>
    %49 = tpu.matmul %48, %7, %cst_22 {dimension_numbers = #tpu.dot_dimension_numbers<[1], [0], [0], [1], [0, 0, 1, 1], [], []>} : vector<32x32xbf16>, vector<32x96xbf16>, vector<32x96xf32> -> vector<32x96xf32>
    %50 = vector.extract_strided_slice %6 {offsets = [32, 0], sizes = [32, 96], strides = [1, 1]} : vector<256x96xf32> to vector<32x96xf32>
    %51 = vector.extract_strided_slice %50 {offsets = [0, 0], sizes = [32, 32], strides = [1, 1]} : vector<32x96xf32> to vector<32x32xf32>
    %52 = vector.extract_strided_slice %49 {offsets = [0, 0], sizes = [32, 32], strides = [1, 1]} : vector<32x96xf32> to vector<32x32xf32>
    %53 = arith.addf %51, %52 : vector<32x32xf32>
    %cst_23 = arith.constant 5.000000e-01 : f32
    %54 = vector.broadcast %cst_23 : f32 to vector<32x32xf32>
    %55 = arith.mulf %54, %53 : vector<32x32xf32>
    %56 = math.tanh %55 : vector<32x32xf32>
    %cst_24 = arith.constant 1.000000e+00 : f32
    %57 = vector.broadcast %cst_24 : f32 to vector<32x32xf32>
    %58 = arith.addf %56, %57 : vector<32x32xf32>
    %cst_25 = arith.constant 5.000000e-01 : f32
    %59 = vector.broadcast %cst_25 : f32 to vector<32x32xf32>
    %60 = arith.mulf %59, %58 : vector<32x32xf32>
    %61 = vector.extract_strided_slice %50 {offsets = [0, 32], sizes = [32, 32], strides = [1, 1]} : vector<32x96xf32> to vector<32x32xf32>
    %62 = vector.extract_strided_slice %49 {offsets = [0, 32], sizes = [32, 32], strides = [1, 1]} : vector<32x96xf32> to vector<32x32xf32>
    %63 = arith.addf %61, %62 : vector<32x32xf32>
    %cst_26 = arith.constant 5.000000e-01 : f32
    %64 = vector.broadcast %cst_26 : f32 to vector<32x32xf32>
    %65 = arith.mulf %64, %63 : vector<32x32xf32>
    %66 = math.tanh %65 : vector<32x32xf32>
    %cst_27 = arith.constant 1.000000e+00 : f32
    %67 = vector.broadcast %cst_27 : f32 to vector<32x32xf32>
    %68 = arith.addf %66, %67 : vector<32x32xf32>
    %cst_28 = arith.constant 5.000000e-01 : f32
    %69 = vector.broadcast %cst_28 : f32 to vector<32x32xf32>
    %70 = arith.mulf %69, %68 : vector<32x32xf32>
    %71 = vector.extract_strided_slice %50 {offsets = [0, 64], sizes = [32, 32], strides = [1, 1]} : vector<32x96xf32> to vector<32x32xf32>
    %72 = vector.extract_strided_slice %49 {offsets = [0, 64], sizes = [32, 32], strides = [1, 1]} : vector<32x96xf32> to vector<32x32xf32>
    %73 = arith.addf %72, %10 : vector<32x32xf32>
    %74 = arith.mulf %60, %73 : vector<32x32xf32>
    %75 = arith.addf %71, %74 : vector<32x32xf32>
    %76 = math.tanh %75 : vector<32x32xf32>
    %cst_29 = arith.constant 1.000000e+00 : f32
    %77 = vector.broadcast %cst_29 : f32 to vector<32x32xf32>
    %78 = arith.subf %77, %70 : vector<32x32xf32>
    %79 = arith.mulf %78, %76 : vector<32x32xf32>
    %80 = arith.mulf %70, %44 : vector<32x32xf32>
    %81 = arith.addf %79, %80 : vector<32x32xf32>
    %c1 = arith.constant 1 : index
    %c0_30 = arith.constant 0 : index
    %c0_31 = arith.constant 0 : index
    %82 = vector.load %arg6[%c1, %c0_30, %c0_31] : memref<8x32x32xf32, #tpu.memory_space<vmem>>, vector<1x32x32xf32>
    %83 = vector.shape_cast %82 : vector<1x32x32xf32> to vector<32x32xf32>
    %84 = vector.shape_cast %81 : vector<32x32xf32> to vector<1x32x32xf32>
    tpu.vector_store %arg6[%c1, %c0_30, %c0_31], %84 {strides = array<i32>} : memref<8x32x32xf32, #tpu.memory_space<vmem>>, vector<1x32x32xf32>,
    %85 = arith.truncf %81 : vector<32x32xf32> to vector<32x32xbf16>
    %cst_32 = arith.constant dense<0.000000e+00> : vector<32x96xf32>
    %86 = tpu.matmul %85, %7, %cst_32 {dimension_numbers = #tpu.dot_dimension_numbers<[1], [0], [0], [1], [0, 0, 1, 1], [], []>} : vector<32x32xbf16>, vector<32x96xbf16>, vector<32x96xf32> -> vector<32x96xf32>
    %87 = vector.extract_strided_slice %6 {offsets = [64, 0], sizes = [32, 96], strides = [1, 1]} : vector<256x96xf32> to vector<32x96xf32>
    %88 = vector.extract_strided_slice %87 {offsets = [0, 0], sizes = [32, 32], strides = [1, 1]} : vector<32x96xf32> to vector<32x32xf32>
    %89 = vector.extract_strided_slice %86 {offsets = [0, 0], sizes = [32, 32], strides = [1, 1]} : vector<32x96xf32> to vector<32x32xf32>
    %90 = arith.addf %88, %89 : vector<32x32xf32>
    %cst_33 = arith.constant 5.000000e-01 : f32
    %91 = vector.broadcast %cst_33 : f32 to vector<32x32xf32>
    %92 = arith.mulf %91, %90 : vector<32x32xf32>
    %93 = math.tanh %92 : vector<32x32xf32>
    %cst_34 = arith.constant 1.000000e+00 : f32
    %94 = vector.broadcast %cst_34 : f32 to vector<32x32xf32>
    %95 = arith.addf %93, %94 : vector<32x32xf32>
    %cst_35 = arith.constant 5.000000e-01 : f32
    %96 = vector.broadcast %cst_35 : f32 to vector<32x32xf32>
    %97 = arith.mulf %96, %95 : vector<32x32xf32>
    %98 = vector.extract_strided_slice %87 {offsets = [0, 32], sizes = [32, 32], strides = [1, 1]} : vector<32x96xf32> to vector<32x32xf32>
    %99 = vector.extract_strided_slice %86 {offsets = [0, 32], sizes = [32, 32], strides = [1, 1]} : vector<32x96xf32> to vector<32x32xf32>
    %100 = arith.addf %98, %99 : vector<32x32xf32>
    %cst_36 = arith.constant 5.000000e-01 : f32
    %101 = vector.broadcast %cst_36 : f32 to vector<32x32xf32>
    %102 = arith.mulf %101, %100 : vector<32x32xf32>
    %103 = math.tanh %102 : vector<32x32xf32>
    %cst_37 = arith.constant 1.000000e+00 : f32
    %104 = vector.broadcast %cst_37 : f32 to vector<32x32xf32>
    %105 = arith.addf %103, %104 : vector<32x32xf32>
    %cst_38 = arith.constant 5.000000e-01 : f32
    %106 = vector.broadcast %cst_38 : f32 to vector<32x32xf32>
    %107 = arith.mulf %106, %105 : vector<32x32xf32>
    %108 = vector.extract_strided_slice %87 {offsets = [0, 64], sizes = [32, 32], strides = [1, 1]} : vector<32x96xf32> to vector<32x32xf32>
    %109 = vector.extract_strided_slice %86 {offsets = [0, 64], sizes = [32, 32], strides = [1, 1]} : vector<32x96xf32> to vector<32x32xf32>
    %110 = arith.addf %109, %10 : vector<32x32xf32>
    %111 = arith.mulf %97, %110 : vector<32x32xf32>
    %112 = arith.addf %108, %111 : vector<32x32xf32>
    %113 = math.tanh %112 : vector<32x32xf32>
    %cst_39 = arith.constant 1.000000e+00 : f32
    %114 = vector.broadcast %cst_39 : f32 to vector<32x32xf32>
    %115 = arith.subf %114, %107 : vector<32x32xf32>
    %116 = arith.mulf %115, %113 : vector<32x32xf32>
    %117 = arith.mulf %107, %81 : vector<32x32xf32>
    %118 = arith.addf %116, %117 : vector<32x32xf32>
    %c2 = arith.constant 2 : index
    %c0_40 = arith.constant 0 : index
    %c0_41 = arith.constant 0 : index
    %119 = vector.load %arg6[%c2, %c0_40, %c0_41] : memref<8x32x32xf32, #tpu.memory_space<vmem>>, vector<1x32x32xf32>
    %120 = vector.shape_cast %119 : vector<1x32x32xf32> to vector<32x32xf32>
    %121 = vector.shape_cast %118 : vector<32x32xf32> to vector<1x32x32xf32>
    tpu.vector_store %arg6[%c2, %c0_40, %c0_41], %121 {strides = array<i32>} : memref<8x32x32xf32, #tpu.memory_space<vmem>>, vector<1x32x32xf32>,
    %122 = arith.truncf %118 : vector<32x32xf32> to vector<32x32xbf16>
    %cst_42 = arith.constant dense<0.000000e+00> : vector<32x96xf32>
    %123 = tpu.matmul %122, %7, %cst_42 {dimension_numbers = #tpu.dot_dimension_numbers<[1], [0], [0], [1], [0, 0, 1, 1], [], []>} : vector<32x32xbf16>, vector<32x96xbf16>, vector<32x96xf32> -> vector<32x96xf32>
    %124 = vector.extract_strided_slice %6 {offsets = [96, 0], sizes = [32, 96], strides = [1, 1]} : vector<256x96xf32> to vector<32x96xf32>
    %125 = vector.extract_strided_slice %124 {offsets = [0, 0], sizes = [32, 32], strides = [1, 1]} : vector<32x96xf32> to vector<32x32xf32>
    %126 = vector.extract_strided_slice %123 {offsets = [0, 0], sizes = [32, 32], strides = [1, 1]} : vector<32x96xf32> to vector<32x32xf32>
    %127 = arith.addf %125, %126 : vector<32x32xf32>
    %cst_43 = arith.constant 5.000000e-01 : f32
    %128 = vector.broadcast %cst_43 : f32 to vector<32x32xf32>
    %129 = arith.mulf %128, %127 : vector<32x32xf32>
    %130 = math.tanh %129 : vector<32x32xf32>
    %cst_44 = arith.constant 1.000000e+00 : f32
    %131 = vector.broadcast %cst_44 : f32 to vector<32x32xf32>
    %132 = arith.addf %130, %131 : vector<32x32xf32>
    %cst_45 = arith.constant 5.000000e-01 : f32
    %133 = vector.broadcast %cst_45 : f32 to vector<32x32xf32>
    %134 = arith.mulf %133, %132 : vector<32x32xf32>
    %135 = vector.extract_strided_slice %124 {offsets = [0, 32], sizes = [32, 32], strides = [1, 1]} : vector<32x96xf32> to vector<32x32xf32>
    %136 = vector.extract_strided_slice %123 {offsets = [0, 32], sizes = [32, 32], strides = [1, 1]} : vector<32x96xf32> to vector<32x32xf32>
    %137 = arith.addf %135, %136 : vector<32x32xf32>
    %cst_46 = arith.constant 5.000000e-01 : f32
    %138 = vector.broadcast %cst_46 : f32 to vector<32x32xf32>
    %139 = arith.mulf %138, %137 : vector<32x32xf32>
    %140 = math.tanh %139 : vector<32x32xf32>
    %cst_47 = arith.constant 1.000000e+00 : f32
    %141 = vector.broadcast %cst_47 : f32 to vector<32x32xf32>
    %142 = arith.addf %140, %141 : vector<32x32xf32>
    %cst_48 = arith.constant 5.000000e-01 : f32
    %143 = vector.broadcast %cst_48 : f32 to vector<32x32xf32>
    %144 = arith.mulf %143, %142 : vector<32x32xf32>
    %145 = vector.extract_strided_slice %124 {offsets = [0, 64], sizes = [32, 32], strides = [1, 1]} : vector<32x96xf32> to vector<32x32xf32>
    %146 = vector.extract_strided_slice %123 {offsets = [0, 64], sizes = [32, 32], strides = [1, 1]} : vector<32x96xf32> to vector<32x32xf32>
    %147 = arith.addf %146, %10 : vector<32x32xf32>
    %148 = arith.mulf %134, %147 : vector<32x32xf32>
    %149 = arith.addf %145, %148 : vector<32x32xf32>
    %150 = math.tanh %149 : vector<32x32xf32>
    %cst_49 = arith.constant 1.000000e+00 : f32
    %151 = vector.broadcast %cst_49 : f32 to vector<32x32xf32>
    %152 = arith.subf %151, %144 : vector<32x32xf32>
    %153 = arith.mulf %152, %150 : vector<32x32xf32>
    %154 = arith.mulf %144, %118 : vector<32x32xf32>
    %155 = arith.addf %153, %154 : vector<32x32xf32>
    %c3 = arith.constant 3 : index
    %c0_50 = arith.constant 0 : index
    %c0_51 = arith.constant 0 : index
    %156 = vector.load %arg6[%c3, %c0_50, %c0_51] : memref<8x32x32xf32, #tpu.memory_space<vmem>>, vector<1x32x32xf32>
    %157 = vector.shape_cast %156 : vector<1x32x32xf32> to vector<32x32xf32>
    %158 = vector.shape_cast %155 : vector<32x32xf32> to vector<1x32x32xf32>
    tpu.vector_store %arg6[%c3, %c0_50, %c0_51], %158 {strides = array<i32>} : memref<8x32x32xf32, #tpu.memory_space<vmem>>, vector<1x32x32xf32>,
    %159 = arith.truncf %155 : vector<32x32xf32> to vector<32x32xbf16>
    %cst_52 = arith.constant dense<0.000000e+00> : vector<32x96xf32>
    %160 = tpu.matmul %159, %7, %cst_52 {dimension_numbers = #tpu.dot_dimension_numbers<[1], [0], [0], [1], [0, 0, 1, 1], [], []>} : vector<32x32xbf16>, vector<32x96xbf16>, vector<32x96xf32> -> vector<32x96xf32>
    %161 = vector.extract_strided_slice %6 {offsets = [128, 0], sizes = [32, 96], strides = [1, 1]} : vector<256x96xf32> to vector<32x96xf32>
    %162 = vector.extract_strided_slice %161 {offsets = [0, 0], sizes = [32, 32], strides = [1, 1]} : vector<32x96xf32> to vector<32x32xf32>
    %163 = vector.extract_strided_slice %160 {offsets = [0, 0], sizes = [32, 32], strides = [1, 1]} : vector<32x96xf32> to vector<32x32xf32>
    %164 = arith.addf %162, %163 : vector<32x32xf32>
    %cst_53 = arith.constant 5.000000e-01 : f32
    %165 = vector.broadcast %cst_53 : f32 to vector<32x32xf32>
    %166 = arith.mulf %165, %164 : vector<32x32xf32>
    %167 = math.tanh %166 : vector<32x32xf32>
    %cst_54 = arith.constant 1.000000e+00 : f32
    %168 = vector.broadcast %cst_54 : f32 to vector<32x32xf32>
    %169 = arith.addf %167, %168 : vector<32x32xf32>
    %cst_55 = arith.constant 5.000000e-01 : f32
    %170 = vector.broadcast %cst_55 : f32 to vector<32x32xf32>
    %171 = arith.mulf %170, %169 : vector<32x32xf32>
    %172 = vector.extract_strided_slice %161 {offsets = [0, 32], sizes = [32, 32], strides = [1, 1]} : vector<32x96xf32> to vector<32x32xf32>
    %173 = vector.extract_strided_slice %160 {offsets = [0, 32], sizes = [32, 32], strides = [1, 1]} : vector<32x96xf32> to vector<32x32xf32>
    %174 = arith.addf %172, %173 : vector<32x32xf32>
    %cst_56 = arith.constant 5.000000e-01 : f32
    %175 = vector.broadcast %cst_56 : f32 to vector<32x32xf32>
    %176 = arith.mulf %175, %174 : vector<32x32xf32>
    %177 = math.tanh %176 : vector<32x32xf32>
    %cst_57 = arith.constant 1.000000e+00 : f32
    %178 = vector.broadcast %cst_57 : f32 to vector<32x32xf32>
    %179 = arith.addf %177, %178 : vector<32x32xf32>
    %cst_58 = arith.constant 5.000000e-01 : f32
    %180 = vector.broadcast %cst_58 : f32 to vector<32x32xf32>
    %181 = arith.mulf %180, %179 : vector<32x32xf32>
    %182 = vector.extract_strided_slice %161 {offsets = [0, 64], sizes = [32, 32], strides = [1, 1]} : vector<32x96xf32> to vector<32x32xf32>
    %183 = vector.extract_strided_slice %160 {offsets = [0, 64], sizes = [32, 32], strides = [1, 1]} : vector<32x96xf32> to vector<32x32xf32>
    %184 = arith.addf %183, %10 : vector<32x32xf32>
    %185 = arith.mulf %171, %184 : vector<32x32xf32>
    %186 = arith.addf %182, %185 : vector<32x32xf32>
    %187 = math.tanh %186 : vector<32x32xf32>
    %cst_59 = arith.constant 1.000000e+00 : f32
    %188 = vector.broadcast %cst_59 : f32 to vector<32x32xf32>
    %189 = arith.subf %188, %181 : vector<32x32xf32>
    %190 = arith.mulf %189, %187 : vector<32x32xf32>
    %191 = arith.mulf %181, %155 : vector<32x32xf32>
    %192 = arith.addf %190, %191 : vector<32x32xf32>
    %c4 = arith.constant 4 : index
    %c0_60 = arith.constant 0 : index
    %c0_61 = arith.constant 0 : index
    %193 = vector.load %arg6[%c4, %c0_60, %c0_61] : memref<8x32x32xf32, #tpu.memory_space<vmem>>, vector<1x32x32xf32>
    %194 = vector.shape_cast %193 : vector<1x32x32xf32> to vector<32x32xf32>
    %195 = vector.shape_cast %192 : vector<32x32xf32> to vector<1x32x32xf32>
    tpu.vector_store %arg6[%c4, %c0_60, %c0_61], %195 {strides = array<i32>} : memref<8x32x32xf32, #tpu.memory_space<vmem>>, vector<1x32x32xf32>,
    %196 = arith.truncf %192 : vector<32x32xf32> to vector<32x32xbf16>
    %cst_62 = arith.constant dense<0.000000e+00> : vector<32x96xf32>
    %197 = tpu.matmul %196, %7, %cst_62 {dimension_numbers = #tpu.dot_dimension_numbers<[1], [0], [0], [1], [0, 0, 1, 1], [], []>} : vector<32x32xbf16>, vector<32x96xbf16>, vector<32x96xf32> -> vector<32x96xf32>
    %198 = vector.extract_strided_slice %6 {offsets = [160, 0], sizes = [32, 96], strides = [1, 1]} : vector<256x96xf32> to vector<32x96xf32>
    %199 = vector.extract_strided_slice %198 {offsets = [0, 0], sizes = [32, 32], strides = [1, 1]} : vector<32x96xf32> to vector<32x32xf32>
    %200 = vector.extract_strided_slice %197 {offsets = [0, 0], sizes = [32, 32], strides = [1, 1]} : vector<32x96xf32> to vector<32x32xf32>
    %201 = arith.addf %199, %200 : vector<32x32xf32>
    %cst_63 = arith.constant 5.000000e-01 : f32
    %202 = vector.broadcast %cst_63 : f32 to vector<32x32xf32>
    %203 = arith.mulf %202, %201 : vector<32x32xf32>
    %204 = math.tanh %203 : vector<32x32xf32>
    %cst_64 = arith.constant 1.000000e+00 : f32
    %205 = vector.broadcast %cst_64 : f32 to vector<32x32xf32>
    %206 = arith.addf %204, %205 : vector<32x32xf32>
    %cst_65 = arith.constant 5.000000e-01 : f32
    %207 = vector.broadcast %cst_65 : f32 to vector<32x32xf32>
    %208 = arith.mulf %207, %206 : vector<32x32xf32>
    %209 = vector.extract_strided_slice %198 {offsets = [0, 32], sizes = [32, 32], strides = [1, 1]} : vector<32x96xf32> to vector<32x32xf32>
    %210 = vector.extract_strided_slice %197 {offsets = [0, 32], sizes = [32, 32], strides = [1, 1]} : vector<32x96xf32> to vector<32x32xf32>
    %211 = arith.addf %209, %210 : vector<32x32xf32>
    %cst_66 = arith.constant 5.000000e-01 : f32
    %212 = vector.broadcast %cst_66 : f32 to vector<32x32xf32>
    %213 = arith.mulf %212, %211 : vector<32x32xf32>
    %214 = math.tanh %213 : vector<32x32xf32>
    %cst_67 = arith.constant 1.000000e+00 : f32
    %215 = vector.broadcast %cst_67 : f32 to vector<32x32xf32>
    %216 = arith.addf %214, %215 : vector<32x32xf32>
    %cst_68 = arith.constant 5.000000e-01 : f32
    %217 = vector.broadcast %cst_68 : f32 to vector<32x32xf32>
    %218 = arith.mulf %217, %216 : vector<32x32xf32>
    %219 = vector.extract_strided_slice %198 {offsets = [0, 64], sizes = [32, 32], strides = [1, 1]} : vector<32x96xf32> to vector<32x32xf32>
    %220 = vector.extract_strided_slice %197 {offsets = [0, 64], sizes = [32, 32], strides = [1, 1]} : vector<32x96xf32> to vector<32x32xf32>
    %221 = arith.addf %220, %10 : vector<32x32xf32>
    %222 = arith.mulf %208, %221 : vector<32x32xf32>
    %223 = arith.addf %219, %222 : vector<32x32xf32>
    %224 = math.tanh %223 : vector<32x32xf32>
    %cst_69 = arith.constant 1.000000e+00 : f32
    %225 = vector.broadcast %cst_69 : f32 to vector<32x32xf32>
    %226 = arith.subf %225, %218 : vector<32x32xf32>
    %227 = arith.mulf %226, %224 : vector<32x32xf32>
    %228 = arith.mulf %218, %192 : vector<32x32xf32>
    %229 = arith.addf %227, %228 : vector<32x32xf32>
    %c5 = arith.constant 5 : index
    %c0_70 = arith.constant 0 : index
    %c0_71 = arith.constant 0 : index
    %230 = vector.load %arg6[%c5, %c0_70, %c0_71] : memref<8x32x32xf32, #tpu.memory_space<vmem>>, vector<1x32x32xf32>
    %231 = vector.shape_cast %230 : vector<1x32x32xf32> to vector<32x32xf32>
    %232 = vector.shape_cast %229 : vector<32x32xf32> to vector<1x32x32xf32>
    tpu.vector_store %arg6[%c5, %c0_70, %c0_71], %232 {strides = array<i32>} : memref<8x32x32xf32, #tpu.memory_space<vmem>>, vector<1x32x32xf32>,
    %233 = arith.truncf %229 : vector<32x32xf32> to vector<32x32xbf16>
    %cst_72 = arith.constant dense<0.000000e+00> : vector<32x96xf32>
    %234 = tpu.matmul %233, %7, %cst_72 {dimension_numbers = #tpu.dot_dimension_numbers<[1], [0], [0], [1], [0, 0, 1, 1], [], []>} : vector<32x32xbf16>, vector<32x96xbf16>, vector<32x96xf32> -> vector<32x96xf32>
    %235 = vector.extract_strided_slice %6 {offsets = [192, 0], sizes = [32, 96], strides = [1, 1]} : vector<256x96xf32> to vector<32x96xf32>
    %236 = vector.extract_strided_slice %235 {offsets = [0, 0], sizes = [32, 32], strides = [1, 1]} : vector<32x96xf32> to vector<32x32xf32>
    %237 = vector.extract_strided_slice %234 {offsets = [0, 0], sizes = [32, 32], strides = [1, 1]} : vector<32x96xf32> to vector<32x32xf32>
    %238 = arith.addf %236, %237 : vector<32x32xf32>
    %cst_73 = arith.constant 5.000000e-01 : f32
    %239 = vector.broadcast %cst_73 : f32 to vector<32x32xf32>
    %240 = arith.mulf %239, %238 : vector<32x32xf32>
    %241 = math.tanh %240 : vector<32x32xf32>
    %cst_74 = arith.constant 1.000000e+00 : f32
    %242 = vector.broadcast %cst_74 : f32 to vector<32x32xf32>
    %243 = arith.addf %241, %242 : vector<32x32xf32>
    %cst_75 = arith.constant 5.000000e-01 : f32
    %244 = vector.broadcast %cst_75 : f32 to vector<32x32xf32>
    %245 = arith.mulf %244, %243 : vector<32x32xf32>
    %246 = vector.extract_strided_slice %235 {offsets = [0, 32], sizes = [32, 32], strides = [1, 1]} : vector<32x96xf32> to vector<32x32xf32>
    %247 = vector.extract_strided_slice %234 {offsets = [0, 32], sizes = [32, 32], strides = [1, 1]} : vector<32x96xf32> to vector<32x32xf32>
    %248 = arith.addf %246, %247 : vector<32x32xf32>
    %cst_76 = arith.constant 5.000000e-01 : f32
    %249 = vector.broadcast %cst_76 : f32 to vector<32x32xf32>
    %250 = arith.mulf %249, %248 : vector<32x32xf32>
    %251 = math.tanh %250 : vector<32x32xf32>
    %cst_77 = arith.constant 1.000000e+00 : f32
    %252 = vector.broadcast %cst_77 : f32 to vector<32x32xf32>
    %253 = arith.addf %251, %252 : vector<32x32xf32>
    %cst_78 = arith.constant 5.000000e-01 : f32
    %254 = vector.broadcast %cst_78 : f32 to vector<32x32xf32>
    %255 = arith.mulf %254, %253 : vector<32x32xf32>
    %256 = vector.extract_strided_slice %235 {offsets = [0, 64], sizes = [32, 32], strides = [1, 1]} : vector<32x96xf32> to vector<32x32xf32>
    %257 = vector.extract_strided_slice %234 {offsets = [0, 64], sizes = [32, 32], strides = [1, 1]} : vector<32x96xf32> to vector<32x32xf32>
    %258 = arith.addf %257, %10 : vector<32x32xf32>
    %259 = arith.mulf %245, %258 : vector<32x32xf32>
    %260 = arith.addf %256, %259 : vector<32x32xf32>
    %261 = math.tanh %260 : vector<32x32xf32>
    %cst_79 = arith.constant 1.000000e+00 : f32
    %262 = vector.broadcast %cst_79 : f32 to vector<32x32xf32>
    %263 = arith.subf %262, %255 : vector<32x32xf32>
    %264 = arith.mulf %263, %261 : vector<32x32xf32>
    %265 = arith.mulf %255, %229 : vector<32x32xf32>
    %266 = arith.addf %264, %265 : vector<32x32xf32>
    %c6 = arith.constant 6 : index
    %c0_80 = arith.constant 0 : index
    %c0_81 = arith.constant 0 : index
    %267 = vector.load %arg6[%c6, %c0_80, %c0_81] : memref<8x32x32xf32, #tpu.memory_space<vmem>>, vector<1x32x32xf32>
    %268 = vector.shape_cast %267 : vector<1x32x32xf32> to vector<32x32xf32>
    %269 = vector.shape_cast %266 : vector<32x32xf32> to vector<1x32x32xf32>
    tpu.vector_store %arg6[%c6, %c0_80, %c0_81], %269 {strides = array<i32>} : memref<8x32x32xf32, #tpu.memory_space<vmem>>, vector<1x32x32xf32>,
    %270 = arith.truncf %266 : vector<32x32xf32> to vector<32x32xbf16>
    %cst_82 = arith.constant dense<0.000000e+00> : vector<32x96xf32>
    %271 = tpu.matmul %270, %7, %cst_82 {dimension_numbers = #tpu.dot_dimension_numbers<[1], [0], [0], [1], [0, 0, 1, 1], [], []>} : vector<32x32xbf16>, vector<32x96xbf16>, vector<32x96xf32> -> vector<32x96xf32>
    %272 = vector.extract_strided_slice %6 {offsets = [224, 0], sizes = [32, 96], strides = [1, 1]} : vector<256x96xf32> to vector<32x96xf32>
    %273 = vector.extract_strided_slice %272 {offsets = [0, 0], sizes = [32, 32], strides = [1, 1]} : vector<32x96xf32> to vector<32x32xf32>
    %274 = vector.extract_strided_slice %271 {offsets = [0, 0], sizes = [32, 32], strides = [1, 1]} : vector<32x96xf32> to vector<32x32xf32>
    %275 = arith.addf %273, %274 : vector<32x32xf32>
    %cst_83 = arith.constant 5.000000e-01 : f32
    %276 = vector.broadcast %cst_83 : f32 to vector<32x32xf32>
    %277 = arith.mulf %276, %275 : vector<32x32xf32>
    %278 = math.tanh %277 : vector<32x32xf32>
    %cst_84 = arith.constant 1.000000e+00 : f32
    %279 = vector.broadcast %cst_84 : f32 to vector<32x32xf32>
    %280 = arith.addf %278, %279 : vector<32x32xf32>
    %cst_85 = arith.constant 5.000000e-01 : f32
    %281 = vector.broadcast %cst_85 : f32 to vector<32x32xf32>
    %282 = arith.mulf %281, %280 : vector<32x32xf32>
    %283 = vector.extract_strided_slice %272 {offsets = [0, 32], sizes = [32, 32], strides = [1, 1]} : vector<32x96xf32> to vector<32x32xf32>
    %284 = vector.extract_strided_slice %271 {offsets = [0, 32], sizes = [32, 32], strides = [1, 1]} : vector<32x96xf32> to vector<32x32xf32>
    %285 = arith.addf %283, %284 : vector<32x32xf32>
    %cst_86 = arith.constant 5.000000e-01 : f32
    %286 = vector.broadcast %cst_86 : f32 to vector<32x32xf32>
    %287 = arith.mulf %286, %285 : vector<32x32xf32>
    %288 = math.tanh %287 : vector<32x32xf32>
    %cst_87 = arith.constant 1.000000e+00 : f32
    %289 = vector.broadcast %cst_87 : f32 to vector<32x32xf32>
    %290 = arith.addf %288, %289 : vector<32x32xf32>
    %cst_88 = arith.constant 5.000000e-01 : f32
    %291 = vector.broadcast %cst_88 : f32 to vector<32x32xf32>
    %292 = arith.mulf %291, %290 : vector<32x32xf32>
    %293 = vector.extract_strided_slice %272 {offsets = [0, 64], sizes = [32, 32], strides = [1, 1]} : vector<32x96xf32> to vector<32x32xf32>
    %294 = vector.extract_strided_slice %271 {offsets = [0, 64], sizes = [32, 32], strides = [1, 1]} : vector<32x96xf32> to vector<32x32xf32>
    %295 = arith.addf %294, %10 : vector<32x32xf32>
    %296 = arith.mulf %282, %295 : vector<32x32xf32>
    %297 = arith.addf %293, %296 : vector<32x32xf32>
    %298 = math.tanh %297 : vector<32x32xf32>
    %cst_89 = arith.constant 1.000000e+00 : f32
    %299 = vector.broadcast %cst_89 : f32 to vector<32x32xf32>
    %300 = arith.subf %299, %292 : vector<32x32xf32>
    %301 = arith.mulf %300, %298 : vector<32x32xf32>
    %302 = arith.mulf %292, %266 : vector<32x32xf32>
    %303 = arith.addf %301, %302 : vector<32x32xf32>
    %c7 = arith.constant 7 : index
    %c0_90 = arith.constant 0 : index
    %c0_91 = arith.constant 0 : index
    %304 = vector.load %arg6[%c7, %c0_90, %c0_91] : memref<8x32x32xf32, #tpu.memory_space<vmem>>, vector<1x32x32xf32>
    %305 = vector.shape_cast %304 : vector<1x32x32xf32> to vector<32x32xf32>
    %306 = vector.shape_cast %303 : vector<32x32xf32> to vector<1x32x32xf32>
    tpu.vector_store %arg6[%c7, %c0_90, %c0_91], %306 {strides = array<i32>} : memref<8x32x32xf32, #tpu.memory_space<vmem>>, vector<1x32x32xf32>,
    return
  }
  func.func @transform_0(%arg0: i32) -> (i32, i32, i32) {
    %c0_i32 = arith.constant 0 : i32
    %c0_i32_0 = arith.constant 0 : i32
    %c0_i32_1 = arith.constant 0 : i32
    return %c0_i32, %arg0, %c0_i32_0 : i32, i32, i32
  }
  func.func @transform_1(%arg0: i32) -> (i32, i32) {
    %c0_i32 = arith.constant 0 : i32
    %c0_i32_0 = arith.constant 0 : i32
    %c0_i32_1 = arith.constant 0 : i32
    return %c0_i32, %c0_i32_0 : i32, i32
  }
  func.func @transform_2(%arg0: i32) -> (i32, i32) {
    %c0_i32 = arith.constant 0 : i32
    %c0_i32_0 = arith.constant 0 : i32
    %c0_i32_1 = arith.constant 0 : i32
    return %c0_i32, %c0_i32_0 : i32, i32
  }
  func.func @transform_3(%arg0: i32) -> (i32, i32) {
    %c0_i32 = arith.constant 0 : i32
    %c0_i32_0 = arith.constant 0 : i32
    %c0_i32_1 = arith.constant 0 : i32
    return %c0_i32, %c0_i32_0 : i32, i32
  }
  func.func @transform_4(%arg0: i32) -> (i32, i32) {
    %c0_i32 = arith.constant 0 : i32
    %c0_i32_0 = arith.constant 0 : i32
    %c0_i32_1 = arith.constant 0 : i32
    return %c0_i32, %c0_i32_0 : i32, i32
  }
  func.func @transform_5(%arg0: i32) -> (i32, i32, i32) {
    %c0_i32 = arith.constant 0 : i32
    %c0_i32_0 = arith.constant 0 : i32
    %c0_i32_1 = arith.constant 0 : i32
    return %c0_i32, %arg0, %c0_i32_0 : i32, i32, i32
  }
}

</mosaic_0001>

<bundles_post_ra>
// kernel: tpu_custom_call.1
= control target key start
LH: loop header
LB: loop body
LE: loop exit
PB: predicated region body
PF: predicated region fallthrough
CT: control target
= control target key end

     0   :  { %10 = vsyncpa [#allocation3], 0  ;;  %s2811_s0 = inlined_call_operand.hbm [shape: bf16[8,32,32], index: 0, kind: input, shape index: {}]   ;;  %s2812_s1 = inlined_call_operand.hbm [shape: bf16[32,96], index: 1, kind: input, shape index: {}]   ;;  %s2813_s2 = inlined_call_operand.hbm [shape: bf16[32,96], index: 2, kind: input, shape index: {}]   ;;  %s2814_s3 = inlined_call_operand.vmem [shape: f32[1,96], index: 3, kind: input, shape index: {}]   ;;  %s2815_s4 = inlined_call_operand.vmem [shape: f32[1,32], index: 4, kind: input, shape index: {}]   ;;  %s2816_s5 = inlined_call_operand.hbm [shape: f32[8,32,32], index: 5, kind: output, shape index: {}]  }
   0x1   :  { %11 = vsyncpa [#allocation6], 0 }
   0x2   :  { %12 = vsyncpa [#allocation4], 0  ;;  %s2277_s18 = smov [#allocation5]   ;;  %s2278_s20 = smov [#allocation2]  }
   0x3   :  { %s30_s19 = sshll.u32 %s2277_s18, 4  ;;  %s18_s21 = sshll.u32 %s2278_s20, 4  ;;  %s31_s19 = int_to_ptr.vmem [resolvable:$true] %s30_s19  ;;  %s19_s21 = int_to_ptr.vmem [resolvable:$true] %s18_s21 }
   0x4   :  { %s2199_s22 = scalar_lea.vmem %s31_s19, 256  ;;  %p2204_p1 = scmp.lt.s32.totalorder %s31_s19, %s31_s19 }
   0x5   :  { %p2200_p0 = scmp.ne.s32.totalorder %s31_s19, %s2199_s22  ;;  %p2205_p2 = scmp.lt.s32.totalorder %s2199_s22, %s2199_s22 }
   0x7   :  { %p2206_p3 = por %p2205_p2, %p2204_p1 }
   0x9   :  { %p2207_p4 = pnand %p2206_p3, %p2200_p0 }
   0xb   :  { %2210 = shalt.err (!%p2207_p4)
}
   0xc   :  { %s2279_s23 = smov 64   ;;  %s2280_s24 = smov 4  }
   0xd   :  { %36 = dma.hbm_to_vmem [thread:$0]  %s2812_s1, 256, %s31_s19, [#allocation6], %s2279_s23, %s2279_s23, %s2280_s24  }
   0xe   :  { %s2219_s27 = scalar_lea.vmem %s19_s21, 2048  ;;  %p2224_p6 = scmp.lt.s32.totalorder %s19_s21, %s19_s21 }
   0xf   :  { %p2220_p5 = scmp.ne.s32.totalorder %s19_s21, %s2219_s27  ;;  %p2225_p7 = scmp.lt.s32.totalorder %s2219_s27, %s2219_s27 }
  0x11   :  { %p2226_p8 = por %p2225_p7, %p2224_p6 }
  0x13   :  { %p2227_p9 = pnand %p2226_p8, %p2220_p5 }
  0x15   :  { %2230 = shalt.err (!%p2227_p9)
}
  0x16   :  { %24 = dma.hbm_to_vmem [thread:$0]  %s2811_s0, 2048, %s19_s21, [#allocation3], %s2279_s23, %s2279_s23, %s2280_s24  }
  0x17   :  { %s2281_s30 = smov [#allocation7]  }
  0x18   :  { %s42_s6 = sshll.u32 %s2281_s30, 4  ;;  %s43_s6 = int_to_ptr.vmem [resolvable:$true] %s42_s6 }
  0x19   :  { %s2239_s7 = scalar_lea.vmem %s43_s6, 256  ;;  %p2244_p11 = scmp.lt.s32.totalorder %s43_s6, %s43_s6 }
  0x1a   :  { %p2240_p10 = scmp.ne.s32.totalorder %s43_s6, %s2239_s7  ;;  %p2245_p12 = scmp.lt.s32.totalorder %s2239_s7, %s2239_s7 }
  0x1c   :  { %p2246_p13 = por %p2245_p12, %p2244_p11 }
  0x1e   :  { %p2247_p0 = pnand %p2246_p13, %p2240_p10 }
  0x20   :  { %2250 = shalt.err (!%p2247_p0)
}
  0x21   :  { %48 = dma.hbm_to_vmem [thread:$0]  %s2813_s2, 256, %s43_s6, [#allocation6], %s2279_s23, %s2279_s23, %s2280_s24  }
  0x22   :  { %2271 = dma.done.wait [#allocation3], 2048  }
  0x23   :  { %2272 = vsyncadd [#allocation3], 4294965248 }
  0x24   :  { %2273 = dma.done.wait [#allocation6], 512  }
  0x25   :  { %2274 = vsyncadd [#allocation6], 4294966784  ;;  %v2040_v0 = vld [vmem:[#allocation5 + $0x8] sm:$0xff]   ;;  %v2041_v1 = vld [vmem:[#allocation5] sm:$0xff]   ;;  %vm198_vm0 = vcmask 261120  }
  0x26   :  { %1939 = vmatprep.subr.bf16.mxu0 %v2040_v0  ;;  %v2042_v2 = vld [vmem:[#allocation2] sm:$0xff]   ;;  %v2043_v3 = vld [vmem:[#allocation2 + $0x8] sm:$0xff]   ;;  %v2359_v43 = vld [vmem:[#allocation7 + $0x8] sm:$0xff]  }
  0x27   :  { %1940 = vmatpush3.bf16.msra.mxu0 %v2040_v0  ;;  %1943 = vmatprep.mubr.msk.bf16.mxu0 %vm198_vm0, %v2042_v2  ;;  %v2336_v4 = vld [vmem:[%s2814_s3] ss:$0 sm:$0xff]  ;;  %v2366_v47 = vld [vmem:[#allocation7] sm:$0xff]   ;;  %v2047_v49 = vld [vmem:[#allocation2 + $0x18] sm:$0xff]  }
  0x28   :  { %1941 = vmatprep.subr.bf16.mxu0 %v2041_v1  ;;  %v2345_v20 = vld [vmem:[%s2815_s4] ss:$0 sm:$0xff]  ;;  %s2282_s4 = smov 96   ;;  %1975 = vmatprep.subr.bf16.mxu1 %v2359_v43  ;;  %v2046_v48 = vld [vmem:[#allocation2 + $0x10] sm:$0xff]  }
  0x29   :  { %1976 = vmatpush3.bf16.msra.mxu1 %v2359_v43 }
  0x2a   :  { %1977 = vmatprep.subr.bf16.mxu1 %v2366_v47 }
  0x2b   :  { %1942 = vmatpush3.bf16.msra.mxu0 %v2041_v1 }
  0x2d   :  { %1978 = vmatpush3.bf16.msra.mxu1 %v2366_v47 }
  0x2e   :  { %1944 = vmatmul.mubr.msk.bf16.vlgmr.msra.gmra.mxu0 %vm198_vm0, %v2043_v3  ;;  %1983 = vmatprep.subr.bf16.mxu1 %v2359_v43 }
  0x2f   :  { %1947 = vmatprep.mubr.msk.bf16.mxu0 %vm198_vm0, %v2046_v48 }
  0x36   :  { %1948 = vmatmul.mubr.msk.bf16.gmra.mxu0 %vm198_vm0, %v2047_v49 }
  0xee   :  { %v1945_v5 = vpop.f32.mrf.mxu0 }
  0xef   :  { %v290_v6 = vadd.f32 %v1945_v5, %v2336_v4 }
  0xf0   :  { %v281_v7 = vpop.f32.mrf.mxu0 }
  0xf1   :  { %v425_v8 = vmul.f32 0.5, %v290_v6  ;;  %v282_v9 = vadd.f32 %v2336_v4, %v281_v7 }
  0xf2   :  { %v1946_v10 = vpop.f32.mrf.mxu0 }
  0xf3   :  { %2060 = vtanh.f32 %v425_v8  ;;  %v423_v11 = vmul.f32 0.5, %v282_v9  ;;  %v293_v12 = vadd.f32 %v1946_v10, %v2336_v4 }
  0xf4   :  { %v284_v13 = vpop.f32.mrf.mxu0 }
  0xf5   :  { %2062 = vtanh.f32 %v423_v11  ;;  %v426_v14 = vmul.f32 0.5, %v293_v12  ;;  %v285_v15 = vadd.f32 %v2336_v4, %v284_v13 }
  0xf7   :  { %2064 = vtanh.f32 %v426_v14  ;;  %v424_v16 = vmul.f32 0.5, %v285_v15 }
  0xf9   :  { %2066 = vtanh.f32 %v424_v16 }
 0x100   :  { %v2061_v17 = vpop.eup %2060 }
 0x101   :  { %v433_v18 = vadd.f32 1.0, %v2061_v17 }
 0x102   :  { %v2063_v19 = vpop.eup %2062 }
 0x103   :  { %v2347_v21 = vmul.f32 0.5, %v433_v18  ;;  %v431_v22 = vadd.f32 1.0, %v2063_v19 }
 0x104   :  { %v2065_v23 = vpop.eup %2064 }
 0x105   :  { %v442_v24 = vmul.f32 %v2345_v20, %v2347_v21  ;;  %v435_v25 = vmul.f32 0.5, %v431_v22  ;;  %v434_v26 = vadd.f32 1.0, %v2065_v23  ;;  %v470_v59 = vsub.f32 1.0, %v2347_v21 }
 0x106   :  { %v2067_v27 = vpop.eup %2066  ;;  %v494_v1 = vmul.f32 0.0, %v2347_v21 }
 0x107   :  { %452 = vrot.lane.b32.xlu1 %v442_v24, %s2279_s23  ;;  %v440_v28 = vmul.f32 %v2345_v20, %v435_v25  ;;  %v438_v29 = vmul.f32 0.5, %v434_v26  ;;  %v432_v30 = vadd.f32 1.0, %v2067_v27  ;;  %v468_v51 = vsub.f32 1.0, %v435_v25 }
 0x108   :  { %v492_v56 = vmul.f32 0.0, %v435_v25 }
 0x109   :  { %448 = vrot.lane.b32.xlu0 %v440_v28, %s2279_s23  ;;  %v443_v31 = vmul.f32 %v2345_v20, %v438_v29  ;;  %v436_v32 = vmul.f32 0.5, %v432_v30  ;;  %v471_v63 = vsub.f32 1.0, %v438_v29  ;;  %v495_v2 = vmul.f32 0.0, %v438_v29 }
 0x10b   :  { %454 = vrot.lane.b32.xlu1 %v443_v31, %s2279_s23  ;;  %v441_v33 = vmul.f32 %v2345_v20, %v436_v32  ;;  %v469_v53 = vsub.f32 1.0, %v436_v32  ;;  %v493_v57 = vmul.f32 0.0, %v436_v32 }
 0x10d   :  { %450 = vrot.lane.b32.xlu0 %v441_v33, %s2279_s23 }
 0x179   :  { %v453_v34 = vpop.permute.xlu1 %452 }
 0x17a   :  { %v462_v37 = vadd.f32 %v453_v34, %v290_v6 }
 0x17b   :  { %v449_v35 = vpop.permute.xlu0 %448 }
 0x17c   :  { %v460_v36 = vadd.f32 %v449_v35, %v282_v9 }
 0x17d   :  { %v455_v38 = vpop.permute.xlu1 %454 }
 0x17e   :  { %2068 = vtanh.f32 %v460_v36  ;;  %v463_v41 = vadd.f32 %v455_v38, %v293_v12 }
 0x17f   :  { %v451_v39 = vpop.permute.xlu0 %450  ;;  %2070 = vtanh.f32 %v462_v37 }
 0x180   :  { %v461_v40 = vadd.f32 %v451_v39, %v285_v15 }
 0x182   :  { %2072 = vtanh.f32 %v461_v40 }
 0x183   :  { %2074 = vtanh.f32 %v463_v41 }
 0x18b   :  { %v2069_v42 = vpop.eup %2068 }
 0x18c   :  { %476 = vrot.lane.b32.xlu0 %v2069_v42, %s2282_s4  ;;  %v2071_v44 = vpop.eup %2070 }
 0x18f   :  { %v2073_v45 = vpop.eup %2072 }
 0x190   :  { %480 = vrot.lane.b32.xlu0 %v2071_v44, %s2282_s4  ;;  %478 = vrot.lane.b32.xlu1 %v2073_v45, %s2282_s4  ;;  %v2075_v46 = vpop.eup %2074 }
 0x194   :  { %482 = vrot.lane.b32.xlu1 %v2075_v46, %s2282_s4 }
 0x1fe   :  { %v477_v50 = vpop.permute.xlu0 %476 }
 0x1ff   :  { %v488_v52 = vmul.f32 %v477_v50, %v468_v51 }
 0x201   :  { %v2374_v60 = vadd.f32 %v492_v56, %v488_v52 }
 0x202   :  { %v479_v54 = vpop.permute.xlu1 %478  ;;  %v481_v55 = vpop.permute.xlu0 %480 }
 0x203   :  { %v489_v58 = vmul.f32 %v479_v54, %v469_v53  ;;  %v490_v62 = vmul.f32 %v481_v55, %v470_v59 }
 0x205   :  { %v2376_v61 = vadd.f32 %v493_v57, %v489_v58  ;;  %v2381_v6 = vadd.f32 %v494_v1, %v490_v62 }
 0x206   :  { %v483_v0 = vpop.permute.xlu1 %482 }
 0x207   :  { %v491_v3 = vmul.f32 %v483_v0, %v471_v63  ;;  %v520_v5 = vpack.c.bf16 %v2376_v61, %v2374_v60 }
 0x209   :  { %v2383_v7 = vadd.f32 %v495_v2, %v491_v3  ;;  %524 = vrot.lane.b32.xlu0 %v520_v5, %s2282_s4 }
 0x20b   :  { %v521_v8 = vpack.c.bf16 %v2383_v7, %v2381_v6 }
 0x20d   :  { %526 = vrot.lane.b32.xlu1 %v521_v8, %s2282_s4  ;;  %615 = vrot.lane.b32.xlu0 %v2345_v20, %s2279_s23  ;;  %v1949_v20 = vpop.f32.mrf.mxu0 }
 0x20e   :  { %v306_v25 = vadd.f32 %v1949_v20, %v2336_v4 }
 0x20f   :  { %v297_v21 = vpop.f32.mrf.mxu0 }
 0x210   :  { %v298_v23 = vadd.f32 %v2336_v4, %v297_v21 }
 0x211   :  { %v1950_v22 = vpop.f32.mrf.mxu0 }
 0x212   :  { %v309_v29 = vadd.f32 %v1950_v22, %v2336_v4 }
 0x213   :  { %v300_v24 = vpop.f32.mrf.mxu0 }
 0x214   :  { %v301_v27 = vadd.f32 %v2336_v4, %v300_v24 }
 0x27b   :  { %v525_v9 = vpop.permute.xlu0 %524 }
 0x27c   :  { %1979 = vmatprep.mubr.msk.bf16.mxu1 %vm198_vm0, %v525_v9 }
 0x27f   :  { %v527_v10 = vpop.permute.xlu1 %526  ;;  %v2397_v12 = vpop.permute.xlu0 %615 }
 0x280   :  { %1980 = vmatmul.mubr.msk.bf16.vlgmr.msra.gmra.mxu1 %vm198_vm0, %v527_v10 }
 0x281   :  { %1984 = vmatpush3.bf16.msra.mxu1 %v2359_v43 }
 0x282   :  { %1985 = vmatprep.subr.bf16.mxu1 %v2366_v47 }
 0x285   :  { %1986 = vmatpush3.bf16.msra.mxu1 %v2366_v47 }
 0x286   :  { %1991 = vmatprep.subr.bf16.mxu1 %v2359_v43 }
 0x340   :  { %v1981_v11 = vpop.f32.mrf.mxu1 }
 0x341   :  { %v620_v18 = vadd.f32 %v1981_v11, %v2397_v12  ;;  %v597_v28 = vadd.f32 %v1981_v11, %v306_v25  ;;  %v2048_v11 = vld [vmem:[#allocation2 + $0x20] sm:$0xff]  }
 0x342   :  { %v580_v13 = vpop.f32.mrf.mxu1  ;;  %1951 = vmatprep.mubr.msk.bf16.mxu0 %vm198_vm0, %v2048_v11 }
 0x343   :  { %v618_v14 = vadd.f32 %v2397_v12, %v580_v13  ;;  %v595_v26 = vadd.f32 %v580_v13, %v298_v23  ;;  %v601_v32 = vmul.f32 0.5, %v597_v28  ;;  %v2049_v13 = vld [vmem:[#allocation2 + $0x28] sm:$0xff]  }
 0x344   :  { %v1982_v15 = vpop.f32.mrf.mxu1  ;;  %1952 = vmatmul.mubr.msk.bf16.gmra.mxu0 %vm198_vm0, %v2049_v13 }
 0x345   :  { %626 = vrot.lane.b32.xlu1 %v618_v14, %s2279_s23  ;;  %v621_v19 = vadd.f32 %v1982_v15, %v2397_v12  ;;  %v599_v30 = vmul.f32 0.5, %v595_v26  ;;  %v598_v33 = vadd.f32 %v1982_v15, %v309_v29 }
 0x346   :  { %v583_v16 = vpop.f32.mrf.mxu1 }
 0x347   :  { %v619_v17 = vadd.f32 %v2397_v12, %v583_v16  ;;  %v596_v31 = vadd.f32 %v583_v16, %v301_v27  ;;  %2076 = vtanh.f32 %v599_v30  ;;  %v602_v35 = vmul.f32 0.5, %v598_v33 }
 0x348   :  { %2078 = vtanh.f32 %v601_v32 }
 0x349   :  { %628 = vrot.lane.b32.xlu0 %v619_v17, %s2279_s23  ;;  %630 = vrot.lane.b32.xlu1 %v620_v18, %s2279_s23  ;;  %v600_v34 = vmul.f32 0.5, %v596_v31 }
 0x34b   :  { %2080 = vtanh.f32 %v600_v34 }
 0x34c   :  { %2082 = vtanh.f32 %v602_v35 }
 0x34d   :  { %632 = vrot.lane.b32.xlu0 %v621_v19, %s2279_s23 }
 0x354   :  { %v2077_v36 = vpop.eup %2076 }
 0x355   :  { %v2079_v37 = vpop.eup %2078  ;;  %v607_v38 = vadd.f32 1.0, %v2077_v36 }
 0x356   :  { %v609_v40 = vadd.f32 1.0, %v2079_v37 }
 0x357   :  { %v611_v42 = vmul.f32 0.5, %v607_v38 }
 0x358   :  { %v2081_v39 = vpop.eup %2080  ;;  %v613_v50 = vmul.f32 0.5, %v609_v40 }
 0x359   :  { %v608_v41 = vadd.f32 1.0, %v2081_v39  ;;  %v2083_v44 = vpop.eup %2082  ;;  %v666_v15 = vsub.f32 1.0, %v611_v42  ;;  %v690_v19 = vmul.f32 %v611_v42, %v2374_v60 }
 0x35a   :  { %v610_v48 = vadd.f32 1.0, %v2083_v44  ;;  %v668_v22 = vsub.f32 1.0, %v613_v50 }
 0x35b   :  { %v612_v49 = vmul.f32 0.5, %v608_v41 }
 0x35c   :  { %v614_v55 = vmul.f32 0.5, %v610_v48 }
 0x35d   :  { %v667_v17 = vsub.f32 1.0, %v612_v49  ;;  %v691_v20 = vmul.f32 %v612_v49, %v2376_v61 }
 0x35e   :  { %v693_v30 = vmul.f32 %v614_v55, %v2383_v7 }
 0x3b7   :  { %v627_v45 = vpop.permute.xlu1 %626 }
 0x3b8   :  { %v638_v46 = vmul.f32 %v627_v45, %v611_v42 }
 0x3ba   :  { %646 = vrot.lane.b32.xlu1 %v638_v46, %s2279_s23 }
 0x3bb   :  { %v629_v51 = vpop.permute.xlu0 %628  ;;  %v631_v52 = vpop.permute.xlu1 %630 }
 0x3bc   :  { %v639_v53 = vmul.f32 %v629_v51, %v612_v49  ;;  %v640_v54 = vmul.f32 %v631_v52, %v613_v50 }
 0x3be   :  { %648 = vrot.lane.b32.xlu0 %v639_v53, %s2279_s23  ;;  %650 = vrot.lane.b32.xlu1 %v640_v54, %s2279_s23 }
 0x3bf   :  { %v633_v56 = vpop.permute.xlu0 %632 }
 0x3c0   :  { %v641_v57 = vmul.f32 %v633_v56, %v614_v55 }
 0x3c2   :  { %652 = vrot.lane.b32.xlu0 %v641_v57, %s2279_s23 }
 0x404   :  { %v1953_v48 = vpop.f32.mrf.mxu0 }
 0x405   :  { %v322_v53 = vadd.f32 %v1953_v48, %v2336_v4 }
 0x406   :  { %v313_v49 = vpop.f32.mrf.mxu0 }
 0x407   :  { %v314_v51 = vadd.f32 %v2336_v4, %v313_v49 }
 0x42c   :  { %v647_v58 = vpop.permute.xlu1 %646 }
 0x42d   :  { %v658_v59 = vadd.f32 %v647_v58, %v298_v23 }
 0x42f   :  { %2084 = vtanh.f32 %v658_v59 }
 0x430   :  { %v649_v62 = vpop.permute.xlu0 %648  ;;  %v651_v63 = vpop.permute.xlu1 %650 }
 0x431   :  { %v659_v0 = vadd.f32 %v649_v62, %v301_v27  ;;  %v660_v1 = vadd.f32 %v651_v63, %v306_v25  ;;  %v669_v27 = vsub.f32 1.0, %v614_v55 }
 0x433   :  { %2086 = vtanh.f32 %v659_v0 }
 0x434   :  { %2088 = vtanh.f32 %v660_v1  ;;  %v653_v2 = vpop.permute.xlu0 %652 }
 0x435   :  { %v661_v3 = vadd.f32 %v653_v2, %v309_v29  ;;  %v692_v29 = vmul.f32 %v613_v50, %v2381_v6  ;;  %v1954_v50 = vpop.f32.mrf.mxu0 }
 0x436   :  { %v325_v57 = vadd.f32 %v1954_v50, %v2336_v4 }
 0x437   :  { %2090 = vtanh.f32 %v661_v3  ;;  %v316_v52 = vpop.f32.mrf.mxu0 }
 0x438   :  { %v317_v55 = vadd.f32 %v2336_v4, %v316_v52 }
 0x43c   :  { %v2085_v5 = vpop.eup %2084 }
 0x43d   :  { %674 = vrot.lane.b32.xlu1 %v2085_v5, %s2282_s4 }
 0x440   :  { %v2087_v8 = vpop.eup %2086 }
 0x441   :  { %v2089_v9 = vpop.eup %2088  ;;  %676 = vrot.lane.b32.xlu0 %v2087_v8, %s2282_s4 }
 0x442   :  { %678 = vrot.lane.b32.xlu1 %v2089_v9, %s2282_s4 }
 0x444   :  { %v2091_v10 = vpop.eup %2090 }
 0x445   :  { %680 = vrot.lane.b32.xlu0 %v2091_v10, %s2282_s4 }
 0x4af   :  { %v675_v14 = vpop.permute.xlu1 %674 }
 0x4b0   :  { %v686_v16 = vmul.f32 %v675_v14, %v666_v15 }
 0x4b2   :  { %v2423_v24 = vadd.f32 %v690_v19, %v686_v16 }
 0x4b3   :  { %v677_v18 = vpop.permute.xlu0 %676 }
 0x4b4   :  { %v687_v21 = vmul.f32 %v677_v18, %v667_v17  ;;  %v679_v23 = vpop.permute.xlu1 %678 }
 0x4b5   :  { %v688_v26 = vmul.f32 %v679_v23, %v668_v22 }
 0x4b6   :  { %v2425_v25 = vadd.f32 %v691_v20, %v687_v21 }
 0x4b7   :  { %v681_v28 = vpop.permute.xlu0 %680  ;;  %v2431_v33 = vadd.f32 %v692_v29, %v688_v26 }
 0x4b8   :  { %v689_v31 = vmul.f32 %v681_v28, %v669_v27  ;;  %v719_v32 = vpack.c.bf16 %v2425_v25, %v2423_v24 }
 0x4ba   :  { %v2433_v34 = vadd.f32 %v693_v30, %v689_v31  ;;  %723 = vrot.lane.b32.xlu1 %v719_v32, %s2282_s4 }
 0x4bc   :  { %v720_v35 = vpack.c.bf16 %v2433_v34, %v2431_v33 }
 0x4be   :  { %725 = vrot.lane.b32.xlu0 %v720_v35, %s2282_s4 }
 0x52c   :  { %v724_v36 = vpop.permute.xlu1 %723 }
 0x52d   :  { %1987 = vmatprep.mubr.msk.bf16.mxu1 %vm198_vm0, %v724_v36 }
 0x530   :  { %v726_v37 = vpop.permute.xlu0 %725 }
 0x531   :  { %1988 = vmatmul.mubr.msk.bf16.vlgmr.msra.gmra.mxu1 %vm198_vm0, %v726_v37 }
 0x532   :  { %1992 = vmatpush3.bf16.msra.mxu1 %v2359_v43 }
 0x533   :  { %1993 = vmatprep.subr.bf16.mxu1 %v2366_v47 }
 0x536   :  { %1994 = vmatpush3.bf16.msra.mxu1 %v2366_v47 }
 0x537   :  { %1999 = vmatprep.subr.bf16.mxu1 %v2359_v43 }
 0x5f1   :  { %v1989_v38 = vpop.f32.mrf.mxu1 }
 0x5f2   :  { %v804_v44 = vadd.f32 %v1989_v38, %v2397_v12  ;;  %v784_v56 = vadd.f32 %v1989_v38, %v322_v53 }
 0x5f3   :  { %v767_v39 = vpop.f32.mrf.mxu1 }
 0x5f4   :  { %v802_v40 = vadd.f32 %v767_v39, %v2397_v12  ;;  %v782_v54 = vadd.f32 %v767_v39, %v314_v51  ;;  %v788_v62 = vmul.f32 0.5, %v784_v56 }
 0x5f5   :  { %v1990_v41 = vpop.f32.mrf.mxu1 }
 0x5f6   :  { %810 = vrot.lane.b32.xlu1 %v802_v40, %s2279_s23  ;;  %v805_v46 = vadd.f32 %v1990_v41, %v2397_v12  ;;  %v786_v58 = vmul.f32 0.5, %v782_v54  ;;  %v785_v63 = vadd.f32 %v1990_v41, %v325_v57 }
 0x5f7   :  { %v770_v42 = vpop.f32.mrf.mxu1 }
 0x5f8   :  { %v803_v45 = vadd.f32 %v770_v42, %v2397_v12  ;;  %v783_v59 = vadd.f32 %v770_v42, %v317_v55  ;;  %2092 = vtanh.f32 %v786_v58  ;;  %v789_v1 = vmul.f32 0.5, %v785_v63  ;;  %v2050_v42 = vld [vmem:[#allocation2 + $0x30] sm:$0xff]  }
 0x5f9   :  { %2094 = vtanh.f32 %v788_v62  ;;  %1955 = vmatprep.mubr.msk.bf16.mxu0 %vm198_vm0, %v2050_v42 }
 0x5fa   :  { %814 = vrot.lane.b32.xlu1 %v804_v44, %s2279_s23  ;;  %812 = vrot.lane.b32.xlu0 %v803_v45, %s2279_s23  ;;  %v787_v0 = vmul.f32 0.5, %v783_v59  ;;  %v2051_v44 = vld [vmem:[#allocation2 + $0x38] sm:$0xff]  }
 0x5fb   :  { %1956 = vmatmul.mubr.msk.bf16.gmra.mxu0 %vm198_vm0, %v2051_v44 }
 0x5fc   :  { %2096 = vtanh.f32 %v787_v0 }
 0x5fd   :  { %2098 = vtanh.f32 %v789_v1 }
 0x5fe   :  { %816 = vrot.lane.b32.xlu0 %v805_v46, %s2279_s23 }
 0x605   :  { %v2093_v2 = vpop.eup %2092 }
 0x606   :  { %v2095_v3 = vpop.eup %2094  ;;  %v794_v5 = vadd.f32 1.0, %v2093_v2 }
 0x607   :  { %v796_v9 = vadd.f32 1.0, %v2095_v3 }
 0x608   :  { %v798_v11 = vmul.f32 0.5, %v794_v5 }
 0x609   :  { %v2097_v8 = vpop.eup %2096  ;;  %v800_v17 = vmul.f32 0.5, %v796_v9 }
 0x60a   :  { %v795_v10 = vadd.f32 1.0, %v2097_v8  ;;  %v2099_v13 = vpop.eup %2098  ;;  %v850_v46 = vsub.f32 1.0, %v798_v11  ;;  %v874_v52 = vmul.f32 %v798_v11, %v2423_v24 }
 0x60b   :  { %v797_v16 = vadd.f32 1.0, %v2099_v13  ;;  %v876_v63 = vmul.f32 %v800_v17, %v2431_v33 }
 0x60c   :  { %v799_v18 = vmul.f32 0.5, %v795_v10 }
 0x60d   :  { %v801_v23 = vmul.f32 0.5, %v797_v16 }
 0x60e   :  { %v851_v49 = vsub.f32 1.0, %v799_v18  ;;  %v875_v54 = vmul.f32 %v799_v18, %v2425_v25 }
 0x60f   :  { %v853_v59 = vsub.f32 1.0, %v801_v23  ;;  %v877_v0 = vmul.f32 %v801_v23, %v2433_v34 }
 0x668   :  { %v811_v14 = vpop.permute.xlu1 %810 }
 0x669   :  { %v822_v15 = vmul.f32 %v811_v14, %v798_v11 }
 0x66b   :  { %830 = vrot.lane.b32.xlu1 %v822_v15, %s2279_s23 }
 0x66c   :  { %v815_v19 = vpop.permute.xlu1 %814  ;;  %v813_v20 = vpop.permute.xlu0 %812 }
 0x66d   :  { %v824_v21 = vmul.f32 %v815_v19, %v800_v17  ;;  %v823_v22 = vmul.f32 %v813_v20, %v799_v18 }
 0x66f   :  { %834 = vrot.lane.b32.xlu1 %v824_v21, %s2279_s23  ;;  %832 = vrot.lane.b32.xlu0 %v823_v22, %s2279_s23 }
 0x670   :  { %v817_v26 = vpop.permute.xlu0 %816 }
 0x671   :  { %v825_v27 = vmul.f32 %v817_v26, %v801_v23 }
 0x673   :  { %836 = vrot.lane.b32.xlu0 %v825_v27, %s2279_s23 }
 0x6bb   :  { %v1957_v20 = vpop.f32.mrf.mxu0 }
 0x6bc   :  { %v338_v27 = vadd.f32 %v1957_v20, %v2336_v4  ;;  %v2052_v20 = vld [vmem:[#allocation2 + $0x40] sm:$0xff]  }
 0x6bd   :  { %v329_v21 = vpop.f32.mrf.mxu0  ;;  %1959 = vmatprep.mubr.msk.bf16.mxu0 %vm198_vm0, %v2052_v20 }
 0x6be   :  { %v330_v23 = vadd.f32 %v2336_v4, %v329_v21  ;;  %v2053_v21 = vld [vmem:[#allocation2 + $0x48] sm:$0xff]  }
 0x6bf   :  { %v1958_v22 = vpop.f32.mrf.mxu0  ;;  %1960 = vmatmul.mubr.msk.bf16.gmra.mxu0 %vm198_vm0, %v2053_v21 }
 0x6c1   :  { %v332_v26 = vpop.f32.mrf.mxu0 }
 0x6dd   :  { %v831_v28 = vpop.permute.xlu1 %830 }
 0x6de   :  { %v842_v29 = vadd.f32 %v831_v28, %v314_v51 }
 0x6e0   :  { %2100 = vtanh.f32 %v842_v29  ;;  %v333_v29 = vadd.f32 %v2336_v4, %v332_v26 }
 0x6e1   :  { %v835_v30 = vpop.permute.xlu1 %834  ;;  %v833_v31 = vpop.permute.xlu0 %832 }
 0x6e2   :  { %v844_v32 = vadd.f32 %v835_v30, %v322_v53  ;;  %v843_v35 = vadd.f32 %v833_v31, %v317_v55  ;;  %v852_v53 = vsub.f32 1.0, %v800_v17  ;;  %v341_v31 = vadd.f32 %v1958_v22, %v2336_v4 }
 0x6e4   :  { %2102 = vtanh.f32 %v844_v32 }
 0x6e5   :  { %2104 = vtanh.f32 %v843_v35  ;;  %v837_v36 = vpop.permute.xlu0 %836 }
 0x6e6   :  { %v845_v37 = vadd.f32 %v837_v36, %v325_v57 }
 0x6e8   :  { %2106 = vtanh.f32 %v845_v37 }
 0x6ed   :  { %v2101_v38 = vpop.eup %2100 }
 0x6ee   :  { %858 = vrot.lane.b32.xlu1 %v2101_v38, %s2282_s4 }
 0x6f1   :  { %v2103_v39 = vpop.eup %2102 }
 0x6f2   :  { %v2105_v40 = vpop.eup %2104  ;;  %862 = vrot.lane.b32.xlu1 %v2103_v39, %s2282_s4 }
 0x6f3   :  { %860 = vrot.lane.b32.xlu0 %v2105_v40, %s2282_s4 }
 0x6f5   :  { %v2107_v41 = vpop.eup %2106 }
 0x6f7   :  { %864 = vrot.lane.b32.xlu0 %v2107_v41, %s2282_s4 }
 0x760   :  { %v859_v45 = vpop.permute.xlu1 %858 }
 0x761   :  { %v870_v48 = vmul.f32 %v859_v45, %v850_v46 }
 0x763   :  { %v2469_v56 = vadd.f32 %v874_v52, %v870_v48 }
 0x764   :  { %v863_v50 = vpop.permute.xlu1 %862 }
 0x765   :  { %v861_v51 = vpop.permute.xlu0 %860  ;;  %v872_v57 = vmul.f32 %v863_v50, %v852_v53 }
 0x766   :  { %v871_v55 = vmul.f32 %v861_v51, %v851_v49 }
 0x767   :  { %v2477_v3 = vadd.f32 %v876_v63, %v872_v57 }
 0x768   :  { %v2471_v58 = vadd.f32 %v875_v54, %v871_v55 }
 0x769   :  { %v865_v62 = vpop.permute.xlu0 %864 }
 0x76a   :  { %v873_v1 = vmul.f32 %v865_v62, %v853_v59  ;;  %v903_v2 = vpack.c.bf16 %v2471_v58, %v2469_v56 }
 0x76c   :  { %v2479_v5 = vadd.f32 %v877_v0, %v873_v1  ;;  %907 = vrot.lane.b32.xlu1 %v903_v2, %s2282_s4 }
 0x76e   :  { %v904_v8 = vpack.c.bf16 %v2479_v5, %v2477_v3 }
 0x770   :  { %909 = vrot.lane.b32.xlu0 %v904_v8, %s2282_s4 }
 0x7de   :  { %v908_v9 = vpop.permute.xlu1 %907 }
 0x7df   :  { %1995 = vmatprep.mubr.msk.bf16.mxu1 %vm198_vm0, %v908_v9 }
 0x7e2   :  { %v910_v10 = vpop.permute.xlu0 %909 }
 0x7e3   :  { %1996 = vmatmul.mubr.msk.bf16.vlgmr.msra.gmra.mxu1 %vm198_vm0, %v910_v10 }
 0x7e4   :  { %2000 = vmatpush3.bf16.msra.mxu1 %v2359_v43 }
 0x7e5   :  { %2001 = vmatprep.subr.bf16.mxu1 %v2366_v47 }
 0x7e8   :  { %2002 = vmatpush3.bf16.msra.mxu1 %v2366_v47 }
 0x7e9   :  { %2007 = vmatprep.subr.bf16.mxu1 %v2359_v43 }
 0x8a3   :  { %v1997_v11 = vpop.f32.mrf.mxu1 }
 0x8a4   :  { %v988_v17 = vadd.f32 %v1997_v11, %v2397_v12  ;;  %v968_v30 = vadd.f32 %v1997_v11, %v338_v27 }
 0x8a5   :  { %v951_v13 = vpop.f32.mrf.mxu1 }
 0x8a6   :  { %v986_v14 = vadd.f32 %v951_v13, %v2397_v12  ;;  %v966_v28 = vadd.f32 %v951_v13, %v330_v23  ;;  %v972_v36 = vmul.f32 0.5, %v968_v30 }
 0x8a7   :  { %v1998_v15 = vpop.f32.mrf.mxu1 }
 0x8a8   :  { %994 = vrot.lane.b32.xlu1 %v986_v14, %s2279_s23  ;;  %v989_v19 = vadd.f32 %v1998_v15, %v2397_v12  ;;  %v970_v32 = vmul.f32 0.5, %v966_v28  ;;  %v969_v37 = vadd.f32 %v1998_v15, %v341_v31 }
 0x8a9   :  { %v954_v16 = vpop.f32.mrf.mxu1 }
 0x8aa   :  { %v987_v18 = vadd.f32 %v954_v16, %v2397_v12  ;;  %v967_v35 = vadd.f32 %v954_v16, %v333_v29  ;;  %2108 = vtanh.f32 %v970_v32  ;;  %v973_v39 = vmul.f32 0.5, %v969_v37 }
 0x8ab   :  { %2110 = vtanh.f32 %v972_v36 }
 0x8ac   :  { %998 = vrot.lane.b32.xlu1 %v988_v17, %s2279_s23  ;;  %996 = vrot.lane.b32.xlu0 %v987_v18, %s2279_s23  ;;  %v971_v38 = vmul.f32 0.5, %v967_v35 }
 0x8ae   :  { %2112 = vtanh.f32 %v971_v38 }
 0x8af   :  { %2114 = vtanh.f32 %v973_v39 }
 0x8b0   :  { %1000 = vrot.lane.b32.xlu0 %v989_v19, %s2279_s23 }
 0x8b7   :  { %v2109_v40 = vpop.eup %2108 }
 0x8b8   :  { %v2111_v41 = vpop.eup %2110  ;;  %v978_v42 = vadd.f32 1.0, %v2109_v40 }
 0x8b9   :  { %v980_v48 = vadd.f32 1.0, %v2111_v41 }
 0x8ba   :  { %v982_v46 = vmul.f32 0.5, %v978_v42 }
 0x8bb   :  { %v2113_v44 = vpop.eup %2112  ;;  %v984_v52 = vmul.f32 0.5, %v980_v48 }
 0x8bc   :  { %v979_v45 = vadd.f32 1.0, %v2113_v44  ;;  %v2115_v49 = vpop.eup %2114  ;;  %v1058_v30 = vmul.f32 %v982_v46, %v2469_v56 }
 0x8bd   :  { %v981_v54 = vadd.f32 1.0, %v2115_v49  ;;  %v1060_v41 = vmul.f32 %v984_v52, %v2477_v3 }
 0x8be   :  { %v983_v53 = vmul.f32 0.5, %v979_v45 }
 0x8bf   :  { %v985_v63 = vmul.f32 0.5, %v981_v54 }
 0x8c0   :  { %v1059_v32 = vmul.f32 %v983_v53, %v2471_v58 }
 0x8c1   :  { %v1037_v39 = vsub.f32 1.0, %v985_v63  ;;  %v1061_v42 = vmul.f32 %v985_v63, %v2479_v5 }
 0x91a   :  { %v995_v50 = vpop.permute.xlu1 %994 }
 0x91b   :  { %v1006_v51 = vmul.f32 %v995_v50, %v982_v46 }
 0x91d   :  { %1014 = vrot.lane.b32.xlu1 %v1006_v51, %s2279_s23 }
 0x91e   :  { %v999_v55 = vpop.permute.xlu1 %998  ;;  %v997_v57 = vpop.permute.xlu0 %996 }
 0x91f   :  { %v1008_v59 = vmul.f32 %v999_v55, %v984_v52  ;;  %v1007_v62 = vmul.f32 %v997_v57, %v983_v53 }
 0x921   :  { %1018 = vrot.lane.b32.xlu1 %v1008_v59, %s2279_s23  ;;  %1016 = vrot.lane.b32.xlu0 %v1007_v62, %s2279_s23 }
 0x922   :  { %v1001_v0 = vpop.permute.xlu0 %1000 }
 0x923   :  { %v1009_v1 = vmul.f32 %v1001_v0, %v985_v63  ;;  %v1961_v0 = vpop.f32.mrf.mxu0 }
 0x925   :  { %1020 = vrot.lane.b32.xlu0 %v1009_v1, %s2279_s23  ;;  %v345_v1 = vpop.f32.mrf.mxu0 }
 0x98f   :  { %v1015_v2 = vpop.permute.xlu1 %1014 }
 0x990   :  { %v1026_v8 = vadd.f32 %v1015_v2, %v330_v23  ;;  %v1034_v23 = vsub.f32 1.0, %v982_v46  ;;  %v1962_v2 = vpop.f32.mrf.mxu0 }
 0x992   :  { %2116 = vtanh.f32 %v1026_v8  ;;  %v346_v8 = vadd.f32 %v2336_v4, %v345_v1 }
 0x993   :  { %v1019_v9 = vpop.permute.xlu1 %1018  ;;  %v1017_v10 = vpop.permute.xlu0 %1016 }
 0x994   :  { %v1028_v11 = vadd.f32 %v1019_v9, %v338_v27  ;;  %v1027_v13 = vadd.f32 %v1017_v10, %v333_v29  ;;  %v1035_v27 = vsub.f32 1.0, %v983_v53  ;;  %v348_v9 = vpop.f32.mrf.mxu0  ;;  %v354_v10 = vadd.f32 %v1961_v0, %v2336_v4 }
 0x996   :  { %2118 = vtanh.f32 %v1028_v11 }
 0x997   :  { %2120 = vtanh.f32 %v1027_v13  ;;  %v1021_v14 = vpop.permute.xlu0 %1020  ;;  %v349_v13 = vadd.f32 %v2336_v4, %v348_v9  ;;  %v2055_v9 = vld [vmem:[#allocation2 + $0x58] sm:$0xff]  }
 0x998   :  { %v1029_v15 = vadd.f32 %v1021_v14, %v341_v31  ;;  %v1036_v31 = vsub.f32 1.0, %v984_v52 }
 0x99a   :  { %2122 = vtanh.f32 %v1029_v15  ;;  %v357_v15 = vadd.f32 %v1962_v2, %v2336_v4 }
 0x99f   :  { %v2117_v16 = vpop.eup %2116 }
 0x9a0   :  { %1042 = vrot.lane.b32.xlu1 %v2117_v16, %s2282_s4 }
 0x9a3   :  { %v2119_v17 = vpop.eup %2118 }
 0x9a4   :  { %v2121_v18 = vpop.eup %2120  ;;  %1046 = vrot.lane.b32.xlu1 %v2119_v17, %s2282_s4 }
 0x9a5   :  { %1044 = vrot.lane.b32.xlu0 %v2121_v18, %s2282_s4 }
 0x9a7   :  { %v2123_v19 = vpop.eup %2122 }
 0x9a9   :  { %1048 = vrot.lane.b32.xlu0 %v2123_v19, %s2282_s4 }
 0xa12   :  { %v1043_v22 = vpop.permute.xlu1 %1042 }
 0xa13   :  { %v1054_v26 = vmul.f32 %v1043_v22, %v1034_v23 }
 0xa15   :  { %v2515_v36 = vadd.f32 %v1058_v30, %v1054_v26 }
 0xa16   :  { %v1047_v28 = vpop.permute.xlu1 %1046 }
 0xa17   :  { %v1045_v29 = vpop.permute.xlu0 %1044  ;;  %v1056_v37 = vmul.f32 %v1047_v28, %v1036_v31 }
 0xa18   :  { %v1055_v35 = vmul.f32 %v1045_v29, %v1035_v27 }
 0xa19   :  { %v2523_v46 = vadd.f32 %v1060_v41, %v1056_v37 }
 0xa1a   :  { %v2517_v38 = vadd.f32 %v1059_v32, %v1055_v35 }
 0xa1b   :  { %v1049_v40 = vpop.permute.xlu0 %1048 }
 0xa1c   :  { %v1057_v44 = vmul.f32 %v1049_v40, %v1037_v39  ;;  %v1087_v45 = vpack.c.bf16 %v2517_v38, %v2515_v36 }
 0xa1e   :  { %v2525_v48 = vadd.f32 %v1061_v42, %v1057_v44  ;;  %1091 = vrot.lane.b32.xlu1 %v1087_v45, %s2282_s4 }
 0xa20   :  { %v1088_v49 = vpack.c.bf16 %v2525_v48, %v2523_v46 }
 0xa22   :  { %1093 = vrot.lane.b32.xlu0 %v1088_v49, %s2282_s4 }
 0xa90   :  { %v1092_v50 = vpop.permute.xlu1 %1091 }
 0xa91   :  { %2003 = vmatprep.mubr.msk.bf16.mxu1 %vm198_vm0, %v1092_v50 }
 0xa94   :  { %v1094_v51 = vpop.permute.xlu0 %1093 }
 0xa95   :  { %2004 = vmatmul.mubr.msk.bf16.vlgmr.msra.gmra.mxu1 %vm198_vm0, %v1094_v51 }
 0xa96   :  { %2008 = vmatpush3.bf16.msra.mxu1 %v2359_v43 }
 0xa97   :  { %2009 = vmatprep.subr.bf16.mxu1 %v2366_v47 }
 0xa9a   :  { %2010 = vmatpush3.bf16.msra.mxu1 %v2366_v47 }
 0xa9b   :  { %2015 = vmatprep.subr.bf16.mxu1 %v2359_v43 }
 0xb55   :  { %v2005_v52 = vpop.f32.mrf.mxu1 }
 0xb56   :  { %v1172_v59 = vadd.f32 %v2005_v52, %v2397_v12  ;;  %v1152_v14 = vadd.f32 %v2005_v52, %v354_v10 }
 0xb57   :  { %v1135_v53 = vpop.f32.mrf.mxu1 }
 0xb58   :  { %v1170_v54 = vadd.f32 %v1135_v53, %v2397_v12  ;;  %v1150_v11 = vadd.f32 %v1135_v53, %v346_v8  ;;  %v1156_v18 = vmul.f32 0.5, %v1152_v14 }
 0xb59   :  { %v2006_v55 = vpop.f32.mrf.mxu1 }
 0xb5a   :  { %1178 = vrot.lane.b32.xlu1 %v1170_v54, %s2279_s23  ;;  %v1173_v63 = vadd.f32 %v2006_v55, %v2397_v12  ;;  %v1154_v16 = vmul.f32 0.5, %v1150_v11  ;;  %v1153_v19 = vadd.f32 %v2006_v55, %v357_v15 }
 0xb5b   :  { %v1138_v57 = vpop.f32.mrf.mxu1 }
 0xb5c   :  { %v1171_v62 = vadd.f32 %v1138_v57, %v2397_v12  ;;  %v1151_v17 = vadd.f32 %v1138_v57, %v349_v13  ;;  %2124 = vtanh.f32 %v1154_v16  ;;  %v1157_v21 = vmul.f32 0.5, %v1153_v19 }
 0xb5d   :  { %2126 = vtanh.f32 %v1156_v18 }
 0xb5e   :  { %1182 = vrot.lane.b32.xlu1 %v1172_v59, %s2279_s23  ;;  %1180 = vrot.lane.b32.xlu0 %v1171_v62, %s2279_s23  ;;  %v1155_v20 = vmul.f32 0.5, %v1151_v17 }
 0xb60   :  { %2128 = vtanh.f32 %v1155_v20 }
 0xb61   :  { %2130 = vtanh.f32 %v1157_v21 }
 0xb62   :  { %1184 = vrot.lane.b32.xlu0 %v1173_v63, %s2279_s23 }
 0xb69   :  { %v2125_v22 = vpop.eup %2124 }
 0xb6a   :  { %v2127_v23 = vpop.eup %2126  ;;  %v1162_v26 = vadd.f32 1.0, %v2125_v22 }
 0xb6b   :  { %v1164_v29 = vadd.f32 1.0, %v2127_v23 }
 0xb6c   :  { %v1166_v28 = vmul.f32 0.5, %v1162_v26 }
 0xb6d   :  { %v2129_v27 = vpop.eup %2128  ;;  %v1168_v35 = vmul.f32 0.5, %v1164_v29 }
 0xb6e   :  { %v1163_v30 = vadd.f32 1.0, %v2129_v27  ;;  %v2131_v31 = vpop.eup %2130  ;;  %v1218_v11 = vsub.f32 1.0, %v1166_v28  ;;  %v1242_v17 = vmul.f32 %v1166_v28, %v2515_v36 }
 0xb6f   :  { %v1165_v39 = vadd.f32 1.0, %v2131_v31  ;;  %v1220_v18 = vsub.f32 1.0, %v1168_v35  ;;  %v1244_v29 = vmul.f32 %v1168_v35, %v2523_v46 }
 0xb70   :  { %v1167_v37 = vmul.f32 0.5, %v1163_v30 }
 0xb71   :  { %v1169_v45 = vmul.f32 0.5, %v1165_v39 }
 0xb72   :  { %v1219_v14 = vsub.f32 1.0, %v1167_v37  ;;  %v1243_v19 = vmul.f32 %v1167_v37, %v2517_v38 }
 0xb73   :  { %v1221_v26 = vsub.f32 1.0, %v1169_v45  ;;  %v1245_v30 = vmul.f32 %v1169_v45, %v2525_v48 }
 0xbcc   :  { %v1179_v32 = vpop.permute.xlu1 %1178 }
 0xbcd   :  { %v1190_v4 = vmul.f32 %v1179_v32, %v1166_v28 }
 0xbcf   :  { %1198 = vrot.lane.b32.xlu1 %v1190_v4, %s2279_s23 }
 0xbd0   :  { %v1183_v40 = vpop.permute.xlu1 %1182  ;;  %v1181_v41 = vpop.permute.xlu0 %1180 }
 0xbd1   :  { %v1192_v42 = vmul.f32 %v1183_v40, %v1168_v35  ;;  %v1191_v44 = vmul.f32 %v1181_v41, %v1167_v37 }
 0xbd3   :  { %1202 = vrot.lane.b32.xlu1 %v1192_v42, %s2279_s23  ;;  %1200 = vrot.lane.b32.xlu0 %v1191_v44, %s2279_s23 }
 0xbd4   :  { %v1185_v49 = vpop.permute.xlu0 %1184 }
 0xbd5   :  { %v1193_v50 = vmul.f32 %v1185_v49, %v1169_v45 }
 0xbd7   :  { %1204 = vrot.lane.b32.xlu0 %v1193_v50, %s2279_s23 }
 0xc41   :  { %v1199_v51 = vpop.permute.xlu1 %1198 }
 0xc42   :  { %v1210_v52 = vadd.f32 %v1199_v51, %v346_v8  ;;  %v2054_v8 = vld [vmem:[#allocation2 + $0x50] sm:$0xff]  }
 0xc43   :  { %1963 = vmatprep.mubr.msk.bf16.mxu0 %vm198_vm0, %v2054_v8 }
 0xc44   :  { %2132 = vtanh.f32 %v1210_v52  ;;  %1964 = vmatmul.mubr.msk.bf16.gmra.mxu0 %vm198_vm0, %v2055_v9 }
 0xc45   :  { %v1203_v53 = vpop.permute.xlu1 %1202  ;;  %v1201_v54 = vpop.permute.xlu0 %1200 }
 0xc46   :  { %v1212_v55 = vadd.f32 %v1203_v53, %v354_v10  ;;  %v1211_v57 = vadd.f32 %v1201_v54, %v349_v13  ;;  %v2594_v53 = vld [vmem:[%s2814_s3] ss:$0 sm:$0xff]  ;;  %s2283_s3 = smov [#allocation8]  }
 0xc47   :  { %s1828_s13 = sshll.u32 %s2283_s3, 4  ;;  %s1829_s13 = int_to_ptr.vmem [resolvable:$true] %s1828_s13 }
 0xc48   :  { %2134 = vtanh.f32 %v1212_v55  ;;  %s2251_s14 = scalar_lea.vmem %s1829_s13, 4096  ;;  %p2256_p2 = scmp.lt.s32.totalorder %s1829_s13, %s1829_s13 }
 0xc49   :  { %2136 = vtanh.f32 %v1211_v57  ;;  %v1205_v59 = vpop.permute.xlu0 %1204  ;;  %p2252_p1 = scmp.ne.s32.totalorder %s1829_s13, %s2251_s14  ;;  %p2257_p3 = scmp.lt.s32.totalorder %s2251_s14, %s2251_s14 }
 0xc4a   :  { %v1213_v62 = vadd.f32 %v1205_v59, %v357_v15 }
 0xc4b   :  { %p2258_p4 = por %p2257_p3, %p2256_p2 }
 0xc4c   :  { %2138 = vtanh.f32 %v1213_v62 }
 0xc4d   :  { %p2259_p5 = pnand %p2258_p4, %p2252_p1 }
 0xc51   :  { %v2133_v63 = vpop.eup %2132 }
 0xc52   :  { %1226 = vrot.lane.b32.xlu1 %v2133_v63, %s2282_s4 }
 0xc55   :  { %v2135_v0 = vpop.eup %2134 }
 0xc56   :  { %v2137_v1 = vpop.eup %2136  ;;  %1230 = vrot.lane.b32.xlu1 %v2135_v0, %s2282_s4 }
 0xc57   :  { %1228 = vrot.lane.b32.xlu0 %v2137_v1, %s2282_s4 }
 0xc59   :  { %v2139_v2 = vpop.eup %2138 }
 0xc5b   :  { %1232 = vrot.lane.b32.xlu0 %v2139_v2, %s2282_s4 }
 0xcc4   :  { %v1227_v10 = vpop.permute.xlu1 %1226 }
 0xcc5   :  { %v1238_v13 = vmul.f32 %v1227_v10, %v1218_v11 }
 0xcc7   :  { %v2561_v21 = vadd.f32 %v1242_v17, %v1238_v13 }
 0xcc8   :  { %v1231_v15 = vpop.permute.xlu1 %1230 }
 0xcc9   :  { %v1229_v16 = vpop.permute.xlu0 %1228  ;;  %v1240_v22 = vmul.f32 %v1231_v15, %v1220_v18 }
 0xcca   :  { %v1239_v20 = vmul.f32 %v1229_v16, %v1219_v14 }
 0xccb   :  { %v2569_v28 = vadd.f32 %v1244_v29, %v1240_v22 }
 0xccc   :  { %v2563_v23 = vadd.f32 %v1243_v19, %v1239_v20 }
 0xccd   :  { %v1233_v27 = vpop.permute.xlu0 %1232 }
 0xcce   :  { %v1241_v31 = vmul.f32 %v1233_v27, %v1221_v26  ;;  %v1271_v32 = vpack.c.bf16 %v2563_v23, %v2561_v21 }
 0xcd0   :  { %v2571_v4 = vadd.f32 %v1245_v30, %v1241_v31  ;;  %1275 = vrot.lane.b32.xlu1 %v1271_v32, %s2282_s4 }
 0xcd2   :  { %v1272_v37 = vpack.c.bf16 %v2571_v4, %v2569_v28 }
 0xcd4   :  { %1277 = vrot.lane.b32.xlu0 %v1272_v37, %s2282_s4 }
 0xd42   :  { %v1276_v39 = vpop.permute.xlu1 %1275 }
 0xd43   :  { %2011 = vmatprep.mubr.msk.bf16.mxu1 %vm198_vm0, %v1276_v39 }
 0xd46   :  { %v1278_v35 = vpop.permute.xlu0 %1277 }
 0xd47   :  { %2012 = vmatmul.mubr.msk.bf16.vlgmr.msra.gmra.mxu1 %vm198_vm0, %v1278_v35 }
 0xd48   :  { %2016 = vmatpush3.bf16.msra.mxu1 %v2359_v43 }
 0xd49   :  { %2017 = vmatprep.subr.bf16.mxu1 %v2366_v47 }
 0xd4c   :  { %2018 = vmatpush3.bf16.msra.mxu1 %v2366_v47 }
 0xd4d   :  { %2023 = vmatprep.subr.bf16.mxu1 %v2359_v43  ;;  %v1965_v43 = vpop.f32.mrf.mxu0 }
 0xd4e   :  { %v370_v57 = vadd.f32 %v2594_v53, %v1965_v43 }
 0xd4f   :  { %v361_v51 = vpop.f32.mrf.mxu0 }
 0xd50   :  { %v362_v54 = vadd.f32 %v2594_v53, %v361_v51 }
 0xd51   :  { %v1966_v52 = vpop.f32.mrf.mxu0 }
 0xd52   :  { %v373_v0 = vadd.f32 %v2594_v53, %v1966_v52 }
 0xd53   :  { %v364_v55 = vpop.f32.mrf.mxu0 }
 0xd54   :  { %v365_v62 = vadd.f32 %v2594_v53, %v364_v55 }
 0xe07   :  { %v2013_v40 = vpop.f32.mrf.mxu1 }
 0xe08   :  { %v1356_v49 = vadd.f32 %v2013_v40, %v2397_v12  ;;  %v1336_v63 = vadd.f32 %v2013_v40, %v370_v57 }
 0xe09   :  { %v1319_v41 = vpop.f32.mrf.mxu1 }
 0xe0a   :  { %v1354_v42 = vadd.f32 %v1319_v41, %v2397_v12  ;;  %v1334_v59 = vadd.f32 %v1319_v41, %v362_v54  ;;  %v1340_v8 = vmul.f32 0.5, %v1336_v63  ;;  %v2056_v63 = vld [vmem:[#allocation2 + $0x60] sm:$0xff]  }
 0xe0b   :  { %v2014_v44 = vpop.f32.mrf.mxu1  ;;  %1967 = vmatprep.mubr.msk.bf16.mxu0 %vm198_vm0, %v2056_v63 }
 0xe0c   :  { %1362 = vrot.lane.b32.xlu1 %v1354_v42, %s2279_s23  ;;  %v1357_v47 = vadd.f32 %v2014_v44, %v2397_v12  ;;  %v1338_v1 = vmul.f32 0.5, %v1334_v59  ;;  %v1337_v9 = vadd.f32 %v2014_v44, %v373_v0 }
 0xe0d   :  { %v1322_v45 = vpop.f32.mrf.mxu1 }
 0xe0e   :  { %v1355_v50 = vadd.f32 %v1322_v45, %v2397_v12  ;;  %v1335_v2 = vadd.f32 %v1322_v45, %v365_v62  ;;  %2140 = vtanh.f32 %v1338_v1  ;;  %v1341_v11 = vmul.f32 0.5, %v1337_v9 }
 0xe0f   :  { %2142 = vtanh.f32 %v1340_v8 }
 0xe10   :  { %1366 = vrot.lane.b32.xlu1 %v1356_v49, %s2279_s23  ;;  %1364 = vrot.lane.b32.xlu0 %v1355_v50, %s2279_s23  ;;  %v1339_v10 = vmul.f32 0.5, %v1335_v2 }
 0xe12   :  { %2144 = vtanh.f32 %v1339_v10 }
 0xe13   :  { %2146 = vtanh.f32 %v1341_v11 }
 0xe14   :  { %1368 = vrot.lane.b32.xlu0 %v1357_v47, %s2279_s23 }
 0xe1b   :  { %v2141_v13 = vpop.eup %2140 }
 0xe1c   :  { %v2143_v14 = vpop.eup %2142  ;;  %v1346_v15 = vadd.f32 1.0, %v2141_v13 }
 0xe1d   :  { %v1348_v18 = vadd.f32 1.0, %v2143_v14 }
 0xe1e   :  { %v1350_v17 = vmul.f32 0.5, %v1346_v15 }
 0xe1f   :  { %v2145_v16 = vpop.eup %2144  ;;  %v1352_v27 = vmul.f32 0.5, %v1348_v18 }
 0xe20   :  { %v1347_v19 = vadd.f32 1.0, %v2145_v16  ;;  %v2147_v20 = vpop.eup %2146  ;;  %v1426_v10 = vmul.f32 %v1350_v17, %v2561_v21 }
 0xe21   :  { %v1349_v30 = vadd.f32 1.0, %v2147_v20  ;;  %v1404_v11 = vsub.f32 1.0, %v1352_v27 }
 0xe22   :  { %v1351_v29 = vmul.f32 0.5, %v1347_v19 }
 0xe23   :  { %v1353_v35 = vmul.f32 0.5, %v1349_v30 }
 0xe24   :  { %v1403_v2 = vsub.f32 1.0, %v1351_v29  ;;  %v1427_v13 = vmul.f32 %v1351_v29, %v2563_v23 }
 0xe25   :  { %v1405_v19 = vsub.f32 1.0, %v1353_v35 }
 0xe7e   :  { %v1363_v22 = vpop.permute.xlu1 %1362 }
 0xe7f   :  { %v1374_v26 = vmul.f32 %v1363_v22, %v1350_v17  ;;  %v1428_v22 = vmul.f32 %v1352_v27, %v2569_v28 }
 0xe81   :  { %1382 = vrot.lane.b32.xlu1 %v1374_v26, %s2279_s23  ;;  %v1429_v26 = vmul.f32 %v1353_v35, %v2571_v4 }
 0xe82   :  { %v1367_v31 = vpop.permute.xlu1 %1366  ;;  %v1365_v32 = vpop.permute.xlu0 %1364 }
 0xe83   :  { %v1376_v37 = vmul.f32 %v1367_v31, %v1352_v27  ;;  %v1375_v39 = vmul.f32 %v1365_v32, %v1351_v29 }
 0xe85   :  { %1386 = vrot.lane.b32.xlu1 %v1376_v37, %s2279_s23  ;;  %1384 = vrot.lane.b32.xlu0 %v1375_v39, %s2279_s23  ;;  %v2189_v39 = vld [vmem:[#allocation7 + $0x8] sm:$0xff]  }
 0xe86   :  { %v1369_v40 = vpop.permute.xlu0 %1368 }
 0xe87   :  { %v1377_v41 = vmul.f32 %v1369_v40, %v1353_v35  ;;  %v2190_v35 = vld [vmem:[#allocation7] sm:$0xff]  }
 0xe89   :  { %1388 = vrot.lane.b32.xlu0 %v1377_v41, %s2279_s23 }
 0xef3   :  { %v1383_v42 = vpop.permute.xlu1 %1382 }
 0xef4   :  { %v1394_v44 = vadd.f32 %v1383_v42, %v362_v54 }
 0xef6   :  { %2148 = vtanh.f32 %v1394_v44 }
 0xef7   :  { %v1387_v45 = vpop.permute.xlu1 %1386  ;;  %v1385_v49 = vpop.permute.xlu0 %1384 }
 0xef8   :  { %v1396_v50 = vadd.f32 %v1387_v45, %v370_v57  ;;  %v1395_v47 = vadd.f32 %v1385_v49, %v365_v62  ;;  %v2057_v57 = vld [vmem:[#allocation2 + $0x68] sm:$0xff]  }
 0xef9   :  { %1968 = vmatmul.mubr.msk.bf16.gmra.mxu0 %vm198_vm0, %v2057_v57 }
 0xefa   :  { %2150 = vtanh.f32 %v1396_v50 }
 0xefb   :  { %2152 = vtanh.f32 %v1395_v47  ;;  %v1389_v43 = vpop.permute.xlu0 %1388 }
 0xefc   :  { %v1397_v51 = vadd.f32 %v1389_v43, %v373_v0  ;;  %v1402_v0 = vsub.f32 1.0, %v1350_v17 }
 0xefe   :  { %2154 = vtanh.f32 %v1397_v51 }
 0xf03   :  { %v2149_v52 = vpop.eup %2148 }
 0xf04   :  { %1410 = vrot.lane.b32.xlu1 %v2149_v52, %s2282_s4 }
 0xf07   :  { %v2151_v55 = vpop.eup %2150 }
 0xf08   :  { %v2153_v59 = vpop.eup %2152  ;;  %1414 = vrot.lane.b32.xlu1 %v2151_v55, %s2282_s4 }
 0xf09   :  { %1412 = vrot.lane.b32.xlu0 %v2153_v59, %s2282_s4 }
 0xf0b   :  { %v2155_v54 = vpop.eup %2154 }
 0xf0d   :  { %1416 = vrot.lane.b32.xlu0 %v2155_v54, %s2282_s4 }
 0xf76   :  { %v1411_v62 = vpop.permute.xlu1 %1410 }
 0xf77   :  { %v1422_v1 = vmul.f32 %v1411_v62, %v1402_v0 }
 0xf79   :  { %v2612_v15 = vadd.f32 %v1426_v10, %v1422_v1 }
 0xf7a   :  { %v1415_v8 = vpop.permute.xlu1 %1414 }
 0xf7b   :  { %v1413_v9 = vpop.permute.xlu0 %1412  ;;  %v1424_v16 = vmul.f32 %v1415_v8, %v1404_v11 }
 0xf7c   :  { %v1423_v14 = vmul.f32 %v1413_v9, %v1403_v2 }
 0xf7d   :  { %v2620_v17 = vadd.f32 %v1428_v22, %v1424_v16 }
 0xf7e   :  { %v2614_v18 = vadd.f32 %v1427_v13, %v1423_v14 }
 0xf7f   :  { %v1417_v20 = vpop.permute.xlu0 %1416 }
 0xf80   :  { %v1425_v30 = vmul.f32 %v1417_v20, %v1405_v19  ;;  %v1455_v31 = vpack.c.bf16 %v2614_v18, %v2612_v15 }
 0xf82   :  { %v2622_v32 = vadd.f32 %v1429_v26, %v1425_v30  ;;  %1459 = vrot.lane.b32.xlu1 %v1455_v31, %s2282_s4 }
 0xf84   :  { %v1456_v29 = vpack.c.bf16 %v2622_v32, %v2620_v17 }
 0xf86   :  { %1461 = vrot.lane.b32.xlu0 %v1456_v29, %s2282_s4 }
 0xfb9   :  { %v1969_v43 = vpop.f32.mrf.mxu0 }
 0xfba   :  { %v386_v54 = vadd.f32 %v2594_v53, %v1969_v43 }
 0xfbb   :  { %v377_v51 = vpop.f32.mrf.mxu0 }
 0xfbc   :  { %v378_v55 = vadd.f32 %v2594_v53, %v377_v51 }
 0xfbd   :  { %v1970_v52 = vpop.f32.mrf.mxu0 }
 0xfbe   :  { %v389_v0 = vadd.f32 %v2594_v53, %v1970_v52 }
 0xfbf   :  { %v380_v59 = vpop.f32.mrf.mxu0 }
 0xfc0   :  { %v381_v57 = vadd.f32 %v2594_v53, %v380_v59 }
 0xff4   :  { %v1460_v37 = vpop.permute.xlu1 %1459 }
 0xff5   :  { %2019 = vmatprep.mubr.msk.bf16.mxu1 %vm198_vm0, %v1460_v37 }
 0xff8   :  { %v1462_v27 = vpop.permute.xlu0 %1461 }
 0xff9   :  { %2020 = vmatmul.mubr.msk.bf16.vlgmr.msra.gmra.mxu1 %vm198_vm0, %v1462_v27 }
 0xffa   :  { %2024 = vmatpush3.bf16.msra.mxu1 %v2189_v39 }
 0xffb   :  { %2025 = vmatprep.subr.bf16.mxu1 %v2190_v35 }
 0xffe   :  { %2026 = vmatpush3.bf16.msra.mxu1 %v2190_v35 }
0x10b9   :  { %v2021_v40 = vpop.f32.mrf.mxu1 }
0x10ba   :  { %v1540_v49 = vadd.f32 %v2021_v40, %v2397_v12  ;;  %v1520_v62 = vadd.f32 %v2021_v40, %v386_v54 }
0x10bb   :  { %v1503_v41 = vpop.f32.mrf.mxu1 }
0x10bc   :  { %v1538_v42 = vadd.f32 %v1503_v41, %v2397_v12  ;;  %v1518_v63 = vadd.f32 %v1503_v41, %v378_v55  ;;  %v1524_v8 = vmul.f32 0.5, %v1520_v62 }
0x10bd   :  { %v2022_v44 = vpop.f32.mrf.mxu1 }
0x10be   :  { %1546 = vrot.lane.b32.xlu1 %v1538_v42, %s2279_s23  ;;  %v1541_v47 = vadd.f32 %v2022_v44, %v2397_v12  ;;  %v1522_v1 = vmul.f32 0.5, %v1518_v63  ;;  %v1521_v9 = vadd.f32 %v2022_v44, %v389_v0 }
0x10bf   :  { %v1506_v45 = vpop.f32.mrf.mxu1 }
0x10c0   :  { %v1539_v50 = vadd.f32 %v1506_v45, %v2397_v12  ;;  %v1519_v2 = vadd.f32 %v1506_v45, %v381_v57  ;;  %2156 = vtanh.f32 %v1522_v1  ;;  %v1525_v11 = vmul.f32 0.5, %v1521_v9  ;;  %v2058_v9 = vld [vmem:[#allocation2 + $0x70] sm:$0xff]  }
0x10c1   :  { %2158 = vtanh.f32 %v1524_v8  ;;  %1971 = vmatprep.mubr.msk.bf16.mxu0 %vm198_vm0, %v2058_v9 }
0x10c2   :  { %1550 = vrot.lane.b32.xlu1 %v1540_v49, %s2279_s23  ;;  %1548 = vrot.lane.b32.xlu0 %v1539_v50, %s2279_s23  ;;  %v1523_v10 = vmul.f32 0.5, %v1519_v2 }
0x10c4   :  { %2160 = vtanh.f32 %v1523_v10 }
0x10c5   :  { %2162 = vtanh.f32 %v1525_v11 }
0x10c6   :  { %1552 = vrot.lane.b32.xlu0 %v1541_v47, %s2279_s23 }
0x10cd   :  { %v2157_v13 = vpop.eup %2156 }
0x10ce   :  { %v2159_v14 = vpop.eup %2158  ;;  %v1530_v16 = vadd.f32 1.0, %v2157_v13 }
0x10cf   :  { %v1532_v22 = vadd.f32 1.0, %v2159_v14 }
0x10d0   :  { %v1534_v20 = vmul.f32 0.5, %v1530_v16 }
0x10d1   :  { %v2161_v19 = vpop.eup %2160  ;;  %v1536_v37 = vmul.f32 0.5, %v1532_v22 }
0x10d2   :  { %v1531_v26 = vadd.f32 1.0, %v2161_v19  ;;  %v2163_v30 = vpop.eup %2162  ;;  %v1610_v16 = vmul.f32 %v1534_v20, %v2612_v15 }
0x10d3   :  { %v1533_v39 = vadd.f32 1.0, %v2163_v30  ;;  %v1588_v19 = vsub.f32 1.0, %v1536_v37 }
0x10d4   :  { %v1535_v27 = vmul.f32 0.5, %v1531_v26 }
0x10d5   :  { %v1537_v44 = vmul.f32 0.5, %v1533_v39 }
0x10d6   :  { %v1587_v11 = vsub.f32 1.0, %v1535_v27  ;;  %v1611_v22 = vmul.f32 %v1535_v27, %v2614_v18 }
0x10d7   :  { %v1589_v39 = vsub.f32 1.0, %v1537_v44 }
0x1130   :  { %v1547_v31 = vpop.permute.xlu1 %1546 }
0x1131   :  { %v1558_v29 = vmul.f32 %v1547_v31, %v1534_v20 }
0x1133   :  { %1566 = vrot.lane.b32.xlu1 %v1558_v29, %s2279_s23 }
0x1134   :  { %v1551_v35 = vpop.permute.xlu1 %1550  ;;  %v1549_v40 = vpop.permute.xlu0 %1548 }
0x1135   :  { %v1560_v41 = vmul.f32 %v1551_v35, %v1536_v37  ;;  %v1559_v42 = vmul.f32 %v1549_v40, %v1535_v27  ;;  %v1612_v40 = vmul.f32 %v1536_v37, %v2620_v17 }
0x1137   :  { %1570 = vrot.lane.b32.xlu1 %v1560_v41, %s2279_s23  ;;  %1568 = vrot.lane.b32.xlu0 %v1559_v42, %s2279_s23  ;;  %v1613_v41 = vmul.f32 %v1537_v44, %v2622_v32 }
0x1138   :  { %v1553_v45 = vpop.permute.xlu0 %1552 }
0x1139   :  { %v1561_v49 = vmul.f32 %v1553_v45, %v1537_v44 }
0x113b   :  { %1572 = vrot.lane.b32.xlu0 %v1561_v49, %s2279_s23 }
0x11a5   :  { %v1567_v50 = vpop.permute.xlu1 %1566 }
0x11a6   :  { %v1578_v47 = vadd.f32 %v1567_v50, %v378_v55 }
0x11a8   :  { %2164 = vtanh.f32 %v1578_v47 }
0x11a9   :  { %v1571_v43 = vpop.permute.xlu1 %1570  ;;  %v1569_v51 = vpop.permute.xlu0 %1568 }
0x11aa   :  { %v1580_v52 = vadd.f32 %v1571_v43, %v386_v54  ;;  %v1579_v59 = vadd.f32 %v1569_v51, %v381_v57  ;;  %v2059_v54 = vld [vmem:[#allocation2 + $0x78] sm:$0xff]  }
0x11ab   :  { %1972 = vmatmul.mubr.msk.bf16.gmra.mxu0 %vm198_vm0, %v2059_v54 }
0x11ac   :  { %2166 = vtanh.f32 %v1580_v52 }
0x11ad   :  { %2168 = vtanh.f32 %v1579_v59  ;;  %v1573_v63 = vpop.permute.xlu0 %1572 }
0x11ae   :  { %v1581_v62 = vadd.f32 %v1573_v63, %v389_v0  ;;  %v1586_v0 = vsub.f32 1.0, %v1534_v20 }
0x11b0   :  { %2170 = vtanh.f32 %v1581_v62 }
0x11b5   :  { %v2165_v1 = vpop.eup %2164 }
0x11b6   :  { %1594 = vrot.lane.b32.xlu1 %v2165_v1, %s2282_s4 }
0x11b9   :  { %v2167_v2 = vpop.eup %2166 }
0x11ba   :  { %v2169_v8 = vpop.eup %2168  ;;  %1598 = vrot.lane.b32.xlu1 %v2167_v2, %s2282_s4 }
0x11bb   :  { %1596 = vrot.lane.b32.xlu0 %v2169_v8, %s2282_s4 }
0x11bd   :  { %v2171_v55 = vpop.eup %2170 }
0x11bf   :  { %1600 = vrot.lane.b32.xlu0 %v2171_v55, %s2282_s4 }
0x1228   :  { %v1595_v57 = vpop.permute.xlu1 %1594 }
0x1229   :  { %v1606_v10 = vmul.f32 %v1595_v57, %v1586_v0 }
0x122b   :  { %v2654_v30 = vadd.f32 %v1610_v16, %v1606_v10 }
0x122c   :  { %v1599_v13 = vpop.permute.xlu1 %1598 }
0x122d   :  { %v1597_v14 = vpop.permute.xlu0 %1596  ;;  %v1608_v31 = vmul.f32 %v1599_v13, %v1588_v19 }
0x122e   :  { %v1607_v26 = vmul.f32 %v1597_v14, %v1587_v11 }
0x122f   :  { %v2662_v20 = vadd.f32 %v1612_v40, %v1608_v31 }
0x1230   :  { %v2656_v29 = vadd.f32 %v1611_v22, %v1607_v26 }
0x1231   :  { %v1601_v35 = vpop.permute.xlu0 %1600 }
0x1232   :  { %v1609_v42 = vmul.f32 %v1601_v35, %v1589_v39  ;;  %v1639_v45 = vpack.c.bf16 %v2656_v29, %v2654_v30 }
0x1234   :  { %v2664_v49 = vadd.f32 %v1613_v41, %v1609_v42  ;;  %1643 = vrot.lane.b32.xlu1 %v1639_v45, %s2282_s4 }
0x1236   :  { %v1640_v27 = vpack.c.bf16 %v2664_v49, %v2662_v20 }
0x1238   :  { %1645 = vrot.lane.b32.xlu0 %v1640_v27, %s2282_s4 }
0x126b   :  { %v1973_v1 = vpop.f32.mrf.mxu0 }
0x126c   :  { %v402_v54 = vadd.f32 %v2594_v53, %v1973_v1 }
0x126d   :  { %v393_v2 = vpop.f32.mrf.mxu0 }
0x126e   :  { %v394_v55 = vadd.f32 %v2594_v53, %v393_v2 }
0x126f   :  { %v1974_v8 = vpop.f32.mrf.mxu0 }
0x1270   :  { %v405_v11 = vadd.f32 %v2594_v53, %v1974_v8 }
0x1271   :  { %v396_v9 = vpop.f32.mrf.mxu0 }
0x1272   :  { %v397_v0 = vadd.f32 %v2594_v53, %v396_v9 }
0x12a6   :  { %v1644_v50 = vpop.permute.xlu1 %1643 }
0x12a7   :  { %2027 = vmatprep.mubr.msk.bf16.mxu1 %vm198_vm0, %v1644_v50 }
0x12aa   :  { %v1646_v37 = vpop.permute.xlu0 %1645 }
0x12ab   :  { %2028 = vmatmul.mubr.msk.bf16.vlgmr.msra.gmra.mxu1 %vm198_vm0, %v1646_v37 }
0x136b   :  { %v2029_v44 = vpop.f32.mrf.mxu1 }
0x136c   :  { %v1724_v63 = vadd.f32 %v2029_v44, %v2397_v12  ;;  %v1704_v10 = vadd.f32 %v2029_v44, %v402_v54 }
0x136d   :  { %v1687_v47 = vpop.f32.mrf.mxu1 }
0x136e   :  { %v1722_v43 = vadd.f32 %v1687_v47, %v2397_v12  ;;  %v1702_v57 = vadd.f32 %v1687_v47, %v394_v55  ;;  %v1708_v16 = vmul.f32 0.5, %v1704_v10 }
0x136f   :  { %v2030_v51 = vpop.f32.mrf.mxu1 }
0x1370   :  { %1730 = vrot.lane.b32.xlu1 %v1722_v43, %s2279_s23  ;;  %v1725_v62 = vadd.f32 %v2030_v51, %v2397_v12  ;;  %v1706_v13 = vmul.f32 0.5, %v1702_v57 }
0x1371   :  { %v1690_v52 = vpop.f32.mrf.mxu1 }
0x1372   :  { %v1723_v59 = vadd.f32 %v1690_v52, %v2397_v12  ;;  %v1703_v14 = vadd.f32 %v1690_v52, %v397_v0  ;;  %2172 = vtanh.f32 %v1706_v13  ;;  %v1705_v12 = vadd.f32 %v2030_v51, %v405_v11 }
0x1373   :  { %2174 = vtanh.f32 %v1708_v16 }
0x1374   :  { %1734 = vrot.lane.b32.xlu1 %v1724_v63, %s2279_s23  ;;  %1732 = vrot.lane.b32.xlu0 %v1723_v59, %s2279_s23  ;;  %v1707_v19 = vmul.f32 0.5, %v1703_v14  ;;  %v1709_v22 = vmul.f32 0.5, %v1705_v12 }
0x1376   :  { %2176 = vtanh.f32 %v1707_v19 }
0x1377   :  { %2178 = vtanh.f32 %v1709_v22 }
0x1378   :  { %1736 = vrot.lane.b32.xlu0 %v1725_v62, %s2279_s23 }
0x137f   :  { %v2173_v26 = vpop.eup %2172 }
0x1380   :  { %v2175_v31 = vpop.eup %2174  ;;  %v1714_v39 = vadd.f32 1.0, %v2173_v26 }
0x1381   :  { %v1716_v42 = vadd.f32 1.0, %v2175_v31 }
0x1382   :  { %v2684_v41 = vmul.f32 0.5, %v1714_v39 }
0x1383   :  { %v2177_v35 = vpop.eup %2176  ;;  %v2688_v50 = vmul.f32 0.5, %v1716_v42 }
0x1384   :  { %v1715_v40 = vadd.f32 1.0, %v2177_v35  ;;  %v2179_v45 = vpop.eup %2178 }
0x1385   :  { %v1717_v44 = vadd.f32 1.0, %v2179_v45 }
0x1386   :  { %v2690_v37 = vmul.f32 0.5, %v1715_v40 }
0x1387   :  { %v2696_v59 = vmul.f32 0.5, %v1717_v44 }
0x13e2   :  { %v1731_v53 = vpop.permute.xlu1 %1730 }
0x13e3   :  { %v1742_v27 = vmul.f32 %v1731_v53, %v2684_v41 }
0x13e5   :  { %1750 = vrot.lane.b32.xlu1 %v1742_v27, %s2279_s23 }
0x13e6   :  { %v1735_v47 = vpop.permute.xlu1 %1734  ;;  %v1733_v43 = vpop.permute.xlu0 %1732 }
0x13e7   :  { %v1744_v51 = vmul.f32 %v1735_v47, %v2688_v50  ;;  %v1743_v52 = vmul.f32 %v1733_v43, %v2690_v37 }
0x13e9   :  { %1754 = vrot.lane.b32.xlu1 %v1744_v51, %s2279_s23  ;;  %1752 = vrot.lane.b32.xlu0 %v1743_v52, %s2279_s23 }
0x13ea   :  { %v1737_v63 = vpop.permute.xlu0 %1736 }
0x13eb   :  { %v1745_v62 = vmul.f32 %v1737_v63, %v2696_v59 }
0x13ed   :  { %1756 = vrot.lane.b32.xlu0 %v1745_v62, %s2279_s23 }
0x1457   :  { %v1751_v1 = vpop.permute.xlu1 %1750 }
0x1458   :  { %v1762_v57 = vadd.f32 %v1751_v1, %v394_v55 }
0x145b   :  { %v1755_v2 = vpop.permute.xlu1 %1754  ;;  %v1753_v8 = vpop.permute.xlu0 %1752 }
0x145c   :  { %v1764_v9 = vadd.f32 %v1755_v2, %v402_v54  ;;  %v1763_v14 = vadd.f32 %v1753_v8, %v397_v0 }
0x145e   :  { %2180 = vtanh.f32 %v1764_v9 }
0x145f   :  { %v1757_v10 = vpop.permute.xlu0 %1756  ;;  %2182 = vtanh.f32 %v1762_v57 }
0x1460   :  { %v1765_v13 = vadd.f32 %v1757_v10, %v405_v11 }
0x1462   :  { %2184 = vtanh.f32 %v1765_v13 }
0x1463   :  { %2186 = vtanh.f32 %v1763_v14 }
0x146b   :  { %v2181_v16 = vpop.eup %2180 }
0x146c   :  { %1782 = vrot.lane.b32.xlu1 %v2181_v16, %s2282_s4  ;;  %v2183_v12 = vpop.eup %2182 }
0x146f   :  { %v2185_v19 = vpop.eup %2184 }
0x1470   :  { %1778 = vrot.lane.b32.xlu1 %v2183_v12, %s2282_s4  ;;  %1784 = vrot.lane.b32.xlu0 %v2185_v19, %s2282_s4  ;;  %v2187_v22 = vpop.eup %2186 }
0x1474   :  { %504 = vrot.lane.b32.xlu1 %v2374_v60, %s2282_s4  ;;  %1780 = vrot.lane.b32.xlu0 %v2187_v22, %s2282_s4 }
0x1478   :  { %508 = vrot.lane.b32.xlu1 %v2381_v6, %s2282_s4  ;;  %506 = vrot.lane.b32.xlu0 %v2376_v61, %s2282_s4  ;;  %v1770_v61 = vsub.f32 1.0, %v2684_v41 }
0x147c   :  { %702 = vrot.lane.b32.xlu1 %v2423_v24, %s2282_s4  ;;  %510 = vrot.lane.b32.xlu0 %v2383_v7, %s2282_s4  ;;  %v1772_v24 = vsub.f32 1.0, %v2688_v50 }
0x1480   :  { %706 = vrot.lane.b32.xlu1 %v2431_v33, %s2282_s4  ;;  %704 = vrot.lane.b32.xlu0 %v2425_v25, %s2282_s4  ;;  %v1794_v25 = vmul.f32 %v2684_v41, %v2654_v30 }
0x1484   :  { %886 = vrot.lane.b32.xlu1 %v2469_v56, %s2282_s4  ;;  %708 = vrot.lane.b32.xlu0 %v2433_v34, %s2282_s4 }
0x1488   :  { %890 = vrot.lane.b32.xlu1 %v2477_v3, %s2282_s4  ;;  %888 = vrot.lane.b32.xlu0 %v2471_v58, %s2282_s4  ;;  %v1771_v58 = vsub.f32 1.0, %v2690_v37 }
0x148c   :  { %1070 = vrot.lane.b32.xlu1 %v2515_v36, %s2282_s4  ;;  %892 = vrot.lane.b32.xlu0 %v2479_v5, %s2282_s4  ;;  %v1796_v36 = vmul.f32 %v2688_v50, %v2662_v20 }
0x1490   :  { %1074 = vrot.lane.b32.xlu1 %v2523_v46, %s2282_s4  ;;  %1072 = vrot.lane.b32.xlu0 %v2517_v38, %s2282_s4  ;;  %v1773_v38 = vsub.f32 1.0, %v2696_v59  ;;  %v1795_v46 = vmul.f32 %v2690_v37, %v2656_v29 }
0x1494   :  { %1254 = vrot.lane.b32.xlu1 %v2561_v21, %s2282_s4  ;;  %1076 = vrot.lane.b32.xlu0 %v2525_v48, %s2282_s4 }
0x1498   :  { %1258 = vrot.lane.b32.xlu1 %v2569_v28, %s2282_s4  ;;  %1256 = vrot.lane.b32.xlu0 %v2563_v23, %s2282_s4 }
0x149c   :  { %1438 = vrot.lane.b32.xlu1 %v2612_v15, %s2282_s4  ;;  %1260 = vrot.lane.b32.xlu0 %v2571_v4, %s2282_s4 }
0x14a0   :  { %1442 = vrot.lane.b32.xlu1 %v2620_v17, %s2282_s4  ;;  %1440 = vrot.lane.b32.xlu0 %v2614_v18, %s2282_s4  ;;  %v1797_v18 = vmul.f32 %v2696_v59, %v2664_v49 }
0x14a4   :  { %1622 = vrot.lane.b32.xlu1 %v2654_v30, %s2282_s4  ;;  %1444 = vrot.lane.b32.xlu0 %v2622_v32, %s2282_s4 }
0x14a8   :  { %1626 = vrot.lane.b32.xlu1 %v2662_v20, %s2282_s4  ;;  %1624 = vrot.lane.b32.xlu0 %v2656_v29, %s2282_s4 }
0x14ac   :  { %1628 = vrot.lane.b32.xlu0 %v2664_v49, %s2282_s4 }
0x14de   :  { %v1783_v60 = vpop.permute.xlu1 %1782 }
0x14df   :  { %v1792_v34 = vmul.f32 %v1783_v60, %v1772_v24 }
0x14e1   :  { %v1800_v21 = vadd.f32 %v1796_v36, %v1792_v34 }
0x14e2   :  { %v1779_v6 = vpop.permute.xlu1 %1778  ;;  %v1785_v7 = vpop.permute.xlu0 %1784 }
0x14e3   :  { %v1790_v33 = vmul.f32 %v1779_v6, %v1770_v61  ;;  %v1793_v23 = vmul.f32 %v1785_v7, %v1773_v38 }
0x14e5   :  { %v1798_v56 = vadd.f32 %v1794_v25, %v1790_v33  ;;  %v1801_v17 = vadd.f32 %v1797_v18, %v1793_v23 }
0x14e6   :  { %v505_v3 = vpop.permute.xlu1 %504  ;;  %v1781_v5 = vpop.permute.xlu0 %1780 }
0x14e7   :  { %516 = vst.msk [vmem:[#allocation8] sm:$0xff] %vm198_vm0, %v505_v3  ;;  %v1791_v48 = vmul.f32 %v1781_v5, %v1771_v58  ;;  %1806 = vrot.lane.b32.xlu1 %v1798_v56, %s2282_s4 }
0x14e9   :  { %v1799_v28 = vadd.f32 %v1795_v46, %v1791_v48 }
0x14ea   :  { %v509_v4 = vpop.permute.xlu1 %508  ;;  %v507_v15 = vpop.permute.xlu0 %506 }
0x14eb   :  { %518 = vst.msk [vmem:[#allocation8 + $0x10] sm:$0xff] %vm198_vm0, %v509_v4  ;;  %517 = vst.msk [vmem:[#allocation8 + $0x8] sm:$0xff] %vm198_vm0, %v507_v15  ;;  %1810 = vrot.lane.b32.xlu1 %v1800_v21, %s2282_s4  ;;  %1808 = vrot.lane.b32.xlu0 %v1799_v28, %s2282_s4 }
0x14ee   :  { %v703_v32 = vpop.permute.xlu1 %702  ;;  %v511_v30 = vpop.permute.xlu0 %510 }
0x14ef   :  { %715 = vst.msk [vmem:[#allocation8 + $0x20] sm:$0xff] %vm198_vm0, %v703_v32  ;;  %519 = vst.msk [vmem:[#allocation8 + $0x18] sm:$0xff] %vm198_vm0, %v511_v30  ;;  %1812 = vrot.lane.b32.xlu0 %v1801_v17, %s2282_s4 }
0x14f2   :  { %v707_v29 = vpop.permute.xlu1 %706  ;;  %v705_v20 = vpop.permute.xlu0 %704 }
0x14f3   :  { %717 = vst.msk [vmem:[#allocation8 + $0x30] sm:$0xff] %vm198_vm0, %v707_v29  ;;  %716 = vst.msk [vmem:[#allocation8 + $0x28] sm:$0xff] %vm198_vm0, %v705_v20 }
0x14f6   :  { %v887_v49 = vpop.permute.xlu1 %886  ;;  %v709_v55 = vpop.permute.xlu0 %708 }
0x14f7   :  { %899 = vst.msk [vmem:[#allocation8 + $0x40] sm:$0xff] %vm198_vm0, %v887_v49  ;;  %718 = vst.msk [vmem:[#allocation8 + $0x38] sm:$0xff] %vm198_vm0, %v709_v55 }
0x14fa   :  { %v891_v54 = vpop.permute.xlu1 %890  ;;  %v889_v0 = vpop.permute.xlu0 %888 }
0x14fb   :  { %901 = vst.msk [vmem:[#allocation8 + $0x50] sm:$0xff] %vm198_vm0, %v891_v54  ;;  %900 = vst.msk [vmem:[#allocation8 + $0x48] sm:$0xff] %vm198_vm0, %v889_v0 }
0x14fe   :  { %v1071_v11 = vpop.permute.xlu1 %1070  ;;  %v893_v26 = vpop.permute.xlu0 %892 }
0x14ff   :  { %1083 = vst.msk [vmem:[#allocation8 + $0x60] sm:$0xff] %vm198_vm0, %v1071_v11  ;;  %902 = vst.msk [vmem:[#allocation8 + $0x58] sm:$0xff] %vm198_vm0, %v893_v26 }
0x1502   :  { %v1075_v31 = vpop.permute.xlu1 %1074  ;;  %v1073_v39 = vpop.permute.xlu0 %1072 }
0x1503   :  { %1085 = vst.msk [vmem:[#allocation8 + $0x70] sm:$0xff] %vm198_vm0, %v1075_v31  ;;  %1084 = vst.msk [vmem:[#allocation8 + $0x68] sm:$0xff] %vm198_vm0, %v1073_v39 }
0x1506   :  { %v1255_v35 = vpop.permute.xlu1 %1254  ;;  %v1077_v40 = vpop.permute.xlu0 %1076 }
0x1507   :  { %1267 = vst.msk [vmem:[#allocation8 + $0x80] sm:$0xff] %vm198_vm0, %v1255_v35  ;;  %1086 = vst.msk [vmem:[#allocation8 + $0x78] sm:$0xff] %vm198_vm0, %v1077_v40 }
0x150a   :  { %v1259_v41 = vpop.permute.xlu1 %1258  ;;  %v1257_v42 = vpop.permute.xlu0 %1256 }
0x150b   :  { %1269 = vst.msk [vmem:[#allocation8 + $0x90] sm:$0xff] %vm198_vm0, %v1259_v41  ;;  %1268 = vst.msk [vmem:[#allocation8 + $0x88] sm:$0xff] %vm198_vm0, %v1257_v42 }
0x150e   :  { %v1439_v45 = vpop.permute.xlu1 %1438  ;;  %v1261_v53 = vpop.permute.xlu0 %1260 }
0x150f   :  { %1451 = vst.msk [vmem:[#allocation8 + $0xa0] sm:$0xff] %vm198_vm0, %v1439_v45  ;;  %1270 = vst.msk [vmem:[#allocation8 + $0x98] sm:$0xff] %vm198_vm0, %v1261_v53 }
0x1512   :  { %v1443_v27 = vpop.permute.xlu1 %1442  ;;  %v1441_v50 = vpop.permute.xlu0 %1440 }
0x1513   :  { %1453 = vst.msk [vmem:[#allocation8 + $0xb0] sm:$0xff] %vm198_vm0, %v1443_v27  ;;  %1452 = vst.msk [vmem:[#allocation8 + $0xa8] sm:$0xff] %vm198_vm0, %v1441_v50 }
0x1516   :  { %v1623_v37 = vpop.permute.xlu1 %1622  ;;  %v1445_v44 = vpop.permute.xlu0 %1444 }
0x1517   :  { %1635 = vst.msk [vmem:[#allocation8 + $0xc0] sm:$0xff] %vm198_vm0, %v1623_v37  ;;  %1454 = vst.msk [vmem:[#allocation8 + $0xb8] sm:$0xff] %vm198_vm0, %v1445_v44 }
0x151a   :  { %v1627_v47 = vpop.permute.xlu1 %1626  ;;  %v1625_v43 = vpop.permute.xlu0 %1624 }
0x151b   :  { %1637 = vst.msk [vmem:[#allocation8 + $0xd0] sm:$0xff] %vm198_vm0, %v1627_v47  ;;  %1636 = vst.msk [vmem:[#allocation8 + $0xc8] sm:$0xff] %vm198_vm0, %v1625_v43 }
0x151e   :  { %v1629_v51 = vpop.permute.xlu0 %1628 }
0x151f   :  { %1638 = vst.msk [vmem:[#allocation8 + $0xd8] sm:$0xff] %vm198_vm0, %v1629_v51 }
0x1559   :  { %v1807_v52 = vpop.permute.xlu1 %1806 }
0x155a   :  { %1819 = vst.msk [vmem:[#allocation8 + $0xe0] sm:$0xff] %vm198_vm0, %v1807_v52 }
0x155d   :  { %v1811_v59 = vpop.permute.xlu1 %1810  ;;  %v1809_v63 = vpop.permute.xlu0 %1808 }
0x155e   :  { %1821 = vst.msk [vmem:[#allocation8 + $0xf0] sm:$0xff] %vm198_vm0, %v1811_v59  ;;  %1820 = vst.msk [vmem:[#allocation8 + $0xe8] sm:$0xff] %vm198_vm0, %v1809_v63 }
0x1561   :  { %v1813_v62 = vpop.permute.xlu0 %1812 }
0x1562   :  { %1822 = vst.msk [vmem:[#allocation8 + $0xf8] sm:$0xff] %vm198_vm0, %v1813_v62 }
0x1563   :  { %2262 = shalt.err (!%p2259_p5)
}
0x1564   :  { %s2284_s15 = smov 128   ;;  %s2285_s16 = smov 8  }
0x1565   :  { %1834 = dma.vmem_to_hbm [thread:$0]  %s1829_s13, 4096, %s2816_s5, [#allocation4], %s2284_s15, %s2284_s15, %s2285_s16  }
0x1566   :  { %2275 = dma.done.wait [#allocation4], 4096  }
0x1567   :  { %2276 = vsyncadd [#allocation4], 4294963200 }
0x1568   :  { %1838 = vsyncpa [#allocation3], 1 }
0x1569   :  { %1839 = vsyncpa [#allocation6], 1 }
0x156a   :  { %1840 = vsyncpa [#allocation4], 1 }

</bundles_post_ra>
